<compile_context>
chip_gen: v6e
topology: v6e:2x2x1
jax: 0.10.0
libtpu: 0.0.40
codegen_flags: <defaults>
</compile_context>

<pallas_src>
import functools

import jax
import jax.numpy as jnp
from jax import lax
from jax.experimental import pallas as pl
from jax.experimental.pallas import tpu as pltpu

_C_PAD = 128  # classifier output padded to one full lane width (unmasked vst)


def _graphsage_kernel(tb,                   # static: rows per B tile
                      nodes_ref,            # SMEM (B,) int32      [scalar prefetch]
                      adj_ref,              # VMEM (tb, tn) bf16   degree-normalized adj tile
                      feats_ref,            # VMEM (tn, F) bf16    feature tile (streamed over N)
                      feats_gather_ref,     # HBM  (N, F) f32      gather source for self rows
                      w_self_ref,           # VMEM (D, F) bf16
                      w_neigh_ref,          # VMEM (D, F) bf16
                      w_cls_ref,            # VMEM (C_PAD, D) bf16
                      out_ref,              # VMEM (tb, C_PAD) f32
                      self_buf,             # VMEM (tb, F) f32 scratch  (gathered self rows)
                      acc_ref,              # VMEM (tb, F) f32 scratch  (neighbor-mean accum)
                      gather_sem):          # DMA semaphores (tb,)
    f32 = jnp.float32
    bf16 = jnp.bfloat16
    b = pl.program_id(0)
    n = pl.program_id(1)
    last_n = pl.num_programs(1) - 1

    # ---- init accumulator + launch the self-row gather DMAs (hidden under the
    #      N-reduction steps; waited just before use in the finalize step).
    @pl.when(n == 0)
    def _init_and_gather():
        acc_ref[...] = jnp.zeros_like(acc_ref)
        base = b * tb
        for i in range(tb):                        # tb is a small compile-time constant
            row = nodes_ref[base + i]              # dynamic scalar read from SMEM
            pltpu.make_async_copy(
                feats_gather_ref.at[pl.ds(row, 1), :],
                self_buf.at[pl.ds(i, 1), :],
                gather_sem.at[i]).start()

    # ---- fused MeanAggregator: accumulate (adj tile) @ (feature tile) on the MXU.
    acc_ref[...] += jnp.dot(adj_ref[...], feats_ref[...],
                            preferred_element_type=f32)

    # ---- finalize: encoder (split weight, concat eliminated) + relu + classifier.
    @pl.when(n == last_n)
    def _finalize():
        for i in range(tb):                        # wait for the self-row gathers
            pltpu.make_async_copy(
                feats_gather_ref.at[pl.ds(0, 1), :],     # dummy src; wait uses dst+sem
                self_buf.at[pl.ds(i, 1), :],
                gather_sem.at[i]).wait()

        self_f = self_buf[...].astype(bf16)        # (tb, F)
        neigh_f = acc_ref[...].astype(bf16)        # (tb, F)
        # pre = self @ W_self.T + neigh @ W_neigh.T  ==  (W_enc @ [self|neigh].T).T
        pre = lax.dot_general(self_f, w_self_ref[...],
                              dimension_numbers=(((1,), (1,)), ((), ())),
                              preferred_element_type=f32)
        pre = pre + lax.dot_general(neigh_f, w_neigh_ref[...],
                                    dimension_numbers=(((1,), (1,)), ((), ())),
                                    preferred_element_type=f32)
        embeds = jnp.maximum(pre, 0.0)             # relu in f32 on the VPU
        scores = lax.dot_general(embeds.astype(bf16), w_cls_ref[...],
                                 dimension_numbers=(((1,), (1,)), ((), ())),
                                 preferred_element_type=f32)    # (tb, C_PAD)
        out_ref[...] = scores.astype(out_ref.dtype)


def prepare_graphsage_params(w_enc, w_cls):
    """One-time (init-time) param prep hoisted out of forward(): split W_enc into
    (W_self | W_neigh), pad the class dim to 128 lanes, cast to bf16 storage."""
    d, two_f = w_enc.shape
    f = two_f // 2
    c = w_cls.shape[0]
    bf16 = jnp.bfloat16
    return {
        "w_self": w_enc[:, :f].astype(bf16),                                 # (D, F)
        "w_neigh": w_enc[:, f:].astype(bf16),                                # (D, F)
        "w_cls_pad": jnp.zeros((_C_PAD, d), bf16).at[:c, :].set(w_cls.astype(bf16)),
        "num_classes": c,
    }


def graphsage_forward(nodes, adj_norm, feats, feats_gather, params, *, tb=8, tn=128):
    """Fused forward: scores = (W_cls @ relu(W_enc @ [self | mean_neigh].T)).T.

    nodes:        (B,)   int32  query node ids (scalar-prefetched to SMEM)
    adj_norm:     (B, N) bf16   degree-normalized sampled adjacency
    feats:        (N, F) bf16   feature table, streamed over N for the neighbor mean
    feats_gather: (N, F) f32    same features, DMA-gather source for exact self rows
    params:       output of prepare_graphsage_params (bf16, already split/padded)
    """
    B = int(nodes.shape[0])
    N, F = feats.shape
    D = params["w_self"].shape[0]
    C = params["num_classes"]
    assert B % tb == 0 and N % tn == 0, "demo requires divisible tiles"
    grid = (B // tb, N // tn)

    cost = pl.CostEstimate(
        flops=2 * B * N * F + 2 * 2 * B * F * D + 2 * B * D * _C_PAD,
        transcendentals=0,
        bytes_accessed=(2 * adj_norm.size                       # adj, bf16
                        + 2 * feats.size * (B // tb)            # feats re-streamed per B tile
                        + 4 * B * F                             # f32 self-row gather
                        + 2 * (params["w_self"].size + params["w_neigh"].size
                               + params["w_cls_pad"].size)      # weights, bf16
                        + 4 * B + 4 * B * _C_PAD),              # nodes + output
    )

    out_pad = pl.pallas_call(
        functools.partial(_graphsage_kernel, tb),
        out_shape=jax.ShapeDtypeStruct((B, _C_PAD), jnp.float32),
        grid_spec=pltpu.PrefetchScalarGridSpec(
            num_scalar_prefetch=1,                               # nodes -> SMEM
            grid=grid,
            in_specs=[
                pl.BlockSpec((tb, tn), lambda b, n, nodes: (b, n)),      # adj tile
                pl.BlockSpec((tn, F), lambda b, n, nodes: (n, 0)),       # feats tile (streamed)
                pl.BlockSpec(memory_space=pl.ANY),                       # feats gather src (HBM)
                pl.BlockSpec((D, F), lambda b, n, nodes: (0, 0)),        # w_self   (resident)
                pl.BlockSpec((D, F), lambda b, n, nodes: (0, 0)),        # w_neigh  (resident)
                pl.BlockSpec((_C_PAD, D), lambda b, n, nodes: (0, 0)),   # w_cls    (resident)
            ],
            out_specs=pl.BlockSpec((tb, _C_PAD), lambda b, n, nodes: (b, 0)),
            scratch_shapes=[
                pltpu.VMEM((tb, F), jnp.float32),                # self-feature rows
                pltpu.VMEM((tb, F), jnp.float32),                # neighbor-mean accumulator
                pltpu.SemaphoreType.DMA((tb,)),                  # one sem per gathered row
            ],
        ),
        compiler_params=pltpu.CompilerParams(
            dimension_semantics=("parallel", "arbitrary")),      # B across cores, N reduction
        cost_estimate=cost,
    )(nodes, adj_norm, feats, feats_gather,
      params["w_self"], params["w_neigh"], params["w_cls_pad"])

    return out_pad[:, :C]


def xavier_uniform(key, shape):
    # matches torch.nn.init.xavier_uniform_ for a 2D weight (fan_out, fan_in)
    fan_out, fan_in = shape
    limit = (6.0 / (fan_in + fan_out)) ** 0.5
    return jax.random.uniform(key, shape, jnp.float32, -limit, limit)


if __name__ == "__main__":
    # Small-but-tileable deterministic setup (grid = (2 B-tiles, 2 N-tiles)).
    N, F, D, C, B = 256, 128, 128, 7, 16
    TB, TN = 8, 128
    # TODO(synk): production tile sizing is generation-aware: ~2x smaller feats/adj
    # tiles on v7x (64 MiB VMEM), 128-wide MXU targets on v5e, >=256-row B tiles on v6e;
    # int8 (v5e/v6e) or fp8 (v7x) feature storage for the aggregation matmuls.

    key = jax.random.PRNGKey(0)
    k_feat, k_adj, k_enc, k_cls = jax.random.split(key, 4)

    feats_f32 = jax.random.normal(k_feat, (N, F), jnp.float32)
    nodes = ((jnp.arange(B, dtype=jnp.int32) * 13 + 5) % N).astype(jnp.int32)

    # Dense degree-normalized sampled neighborhood (stand-in for MeanAggregator).
    # TODO(synk): at graph scale, replace with sampled neighbor index lists and
    # DMA-gather S neighbors per node (same P2/P4 pattern as the self gather).
    adj_mask = (jax.random.uniform(k_adj, (B, N)) < 0.1).astype(jnp.float32)
    adj_mask = adj_mask.at[jnp.arange(B), (nodes + 1) % N].set(1.0)   # ensure >=1 neighbor
    deg = jnp.sum(adj_mask, axis=1, keepdims=True)
    adj_f32 = adj_mask / deg                                          # (B, N)

    # Parameters (deterministic xavier uniform, as in the PyTorch __init__s).
    w_enc = xavier_uniform(k_enc, (D, 2 * F))     # Encoder.weight
    w_cls = xavier_uniform(k_cls, (C, D))         # SupervisedGraphSage.weight

    # ---- init-time prep (hoisted out of the per-call path) ----
    params = prepare_graphsage_params(w_enc, w_cls)
    feats_bf16 = feats_f32.astype(jnp.bfloat16)   # bandwidth-heavy operand stored bf16
    adj_bf16 = adj_f32.astype(jnp.bfloat16)
    # TODO(synk): to avoid the extra f32 gather copy at graph scale, store features
    # once (bf16) and gather self rows via packed-u32 DMAs.

    # Pallas fused forward.
    scores = graphsage_forward(nodes, adj_bf16, feats_bf16, feats_f32, params,
                               tb=TB, tn=TN)
    scores = jax.block_until_ready(scores)
    assert scores.shape == (B, C)

    # f32 reference (same math as the PyTorch forward), using the bf16-stored
    # operands the kernel sees (upcast) and the exact-f32 self-feature gather.
    f_ref = feats_bf16.astype(jnp.float32)
    a_ref = adj_bf16.astype(jnp.float32)
    w_enc_ref = jnp.concatenate([params["w_self"], params["w_neigh"]],
                                axis=1).astype(jnp.float32)
    w_cls_ref = params["w_cls_pad"][:C].astype(jnp.float32)
    self_feats = feats_f32[nodes]                                    # exact f32 gather
    neigh_feats = a_ref @ f_ref
    combined = jnp.concatenate([self_feats, neigh_feats], axis=1)    # (B, 2F)
    embeds_ref = jnp.maximum(w_enc_ref @ combined.T, 0.0)            # (D, B)
    scores_ref = (w_cls_ref @ embeds_ref).T                          # (B, C)

    max_err = float(jnp.max(jnp.abs(scores - scores_ref)))
    assert jnp.allclose(scores, scores_ref, atol=5e-2, rtol=5e-2), max_err

    # TODO(synk): loss()/nn.CrossEntropyLoss is training-only, not part of forward(); omitted.
    print("KERNEL_OK")
</pallas_src>

<mosaic_0001>
module attributes {stable_mosaic.version = 11 : i64} {
  func.func @_graphsage_kernel(%arg0: i32, %arg1: i32, %arg2: memref<16xi32, #tpu.memory_space<smem>>, %arg3: memref<8x128xbf16, #tpu.memory_space<vmem>>, %arg4: memref<128x128xbf16, #tpu.memory_space<vmem>>, %arg5: memref<256x128xf32, #tpu.memory_space<any>>, %arg6: memref<128x128xbf16, #tpu.memory_space<vmem>>, %arg7: memref<128x128xbf16, #tpu.memory_space<vmem>>, %arg8: memref<128x128xbf16, #tpu.memory_space<vmem>>, %arg9: memref<8x128xf32, #tpu.memory_space<vmem>>, %arg10: memref<8x128xf32, #tpu.memory_space<vmem>>, %arg11: memref<8x128xf32, #tpu.memory_space<vmem>>, %arg12: memref<8x!tpu.dma_semaphore, #tpu.memory_space<semaphore_mem>>) attributes {dimension_semantics = [#tpu.dimension_semantics<parallel>, #tpu.dimension_semantics<arbitrary>], iteration_bounds = array<i64: 2, 2>, scalar_prefetch = 1 : i64, scratch_operands = 3 : i64, tpu.core_type = #tpu.core_type<tc>, window_params = [{transform_indices = @transform_0, window_bounds = array<i64: 8, 128>}, {transform_indices = @transform_1, window_bounds = array<i64: 128, 128>}, {}, {pipeline_mode = #tpu.pipeline_mode<synchronous>, transform_indices = @transform_3, window_bounds = array<i64: 128, 128>}, {pipeline_mode = #tpu.pipeline_mode<synchronous>, transform_indices = @transform_4, window_bounds = array<i64: 128, 128>}, {pipeline_mode = #tpu.pipeline_mode<synchronous>, transform_indices = @transform_5, window_bounds = array<i64: 128, 128>}, {transform_indices = @transform_6, window_bounds = array<i64: 8, 128>}]} {
    %c0_i32 = arith.constant 0 : i32
    %0 = arith.cmpi eq, %arg1, %c0_i32 : i32
    %1 = arith.extui %0 : i1 to i32
    %c0_i32_0 = arith.constant 0 : i32
    %2 = arith.cmpi ne, %1, %c0_i32_0 : i32
    scf.if %2 {
      %cst_9 = arith.constant 0.000000e+00 : f32
      %12 = vector.broadcast %cst_9 : f32 to vector<8x128xf32>
      %c0_10 = arith.constant 0 : index
      %c0_11 = arith.constant 0 : index
      %13 = vector.load %arg11[%c0_10, %c0_11] : memref<8x128xf32, #tpu.memory_space<vmem>>, vector<8x128xf32>
      tpu.vector_store %arg11[%c0_10, %c0_11], %12 {strides = array<i32>} : memref<8x128xf32, #tpu.memory_space<vmem>>, vector<8x128xf32>,
      %c8_i32 = arith.constant 8 : i32
      %14 = arith.muli %arg0, %c8_i32 : i32
      %c0_i32_12 = arith.constant 0 : i32
      %15 = arith.addi %14, %c0_i32_12 : i32
      %16 = arith.index_cast %15 : i32 to index
      %17 = memref.load %arg2[%16] : memref<16xi32, #tpu.memory_space<smem>>
      %c0_i32_13 = arith.constant 0 : i32
      %c0_i32_14 = arith.constant 0 : i32
      %18 = tpu.memref_slice %arg5[%17, %c0_i32_14] : memref<256x128xf32, #tpu.memory_space<any>> -> memref<1x128xf32, #tpu.memory_space<any>>
      %c0_i32_15 = arith.constant 0 : i32
      %c0_i32_16 = arith.constant 0 : i32
      %19 = tpu.memref_slice %arg10[%c0_i32_15, %c0_i32_16] : memref<8x128xf32, #tpu.memory_space<vmem>> -> memref<1x128xf32, #tpu.memory_space<vmem>>
      %20 = tpu.memref_slice %arg12[%c0_i32_13] : memref<8x!tpu.dma_semaphore, #tpu.memory_space<semaphore_mem>> -> memref<1x!tpu.dma_semaphore, #tpu.memory_space<semaphore_mem>>
      %21 = tpu.memref_squeeze %20 : memref<1x!tpu.dma_semaphore, #tpu.memory_space<semaphore_mem>> -> memref<!tpu.dma_semaphore, #tpu.memory_space<semaphore_mem>>
      tpu.enqueue_dma source(%18 : memref<1x128xf32, #tpu.memory_space<any>>) target(%19 : memref<1x128xf32, #tpu.memory_space<vmem>>) target_semaphore(%21 : memref<!tpu.dma_semaphore, #tpu.memory_space<semaphore_mem>>)
      %c1_i32_17 = arith.constant 1 : i32
      %22 = arith.addi %14, %c1_i32_17 : i32
      %23 = arith.index_cast %22 : i32 to index
      %24 = memref.load %arg2[%23] : memref<16xi32, #tpu.memory_space<smem>>
      %c1_i32_18 = arith.constant 1 : i32
      %c0_i32_19 = arith.constant 0 : i32
      %25 = tpu.memref_slice %arg5[%24, %c0_i32_19] : memref<256x128xf32, #tpu.memory_space<any>> -> memref<1x128xf32, #tpu.memory_space<any>>
      %c1_i32_20 = arith.constant 1 : i32
      %c0_i32_21 = arith.constant 0 : i32
      %26 = tpu.memref_slice %arg10[%c1_i32_20, %c0_i32_21] : memref<8x128xf32, #tpu.memory_space<vmem>> -> memref<1x128xf32, #tpu.memory_space<vmem>>
      %27 = tpu.memref_slice %arg12[%c1_i32_18] : memref<8x!tpu.dma_semaphore, #tpu.memory_space<semaphore_mem>> -> memref<1x!tpu.dma_semaphore, #tpu.memory_space<semaphore_mem>>
      %28 = tpu.memref_squeeze %27 : memref<1x!tpu.dma_semaphore, #tpu.memory_space<semaphore_mem>> -> memref<!tpu.dma_semaphore, #tpu.memory_space<semaphore_mem>>
      tpu.enqueue_dma source(%25 : memref<1x128xf32, #tpu.memory_space<any>>) target(%26 : memref<1x128xf32, #tpu.memory_space<vmem>>) target_semaphore(%28 : memref<!tpu.dma_semaphore, #tpu.memory_space<semaphore_mem>>)
      %c2_i32 = arith.constant 2 : i32
      %29 = arith.addi %14, %c2_i32 : i32
      %30 = arith.index_cast %29 : i32 to index
      %31 = memref.load %arg2[%30] : memref<16xi32, #tpu.memory_space<smem>>
      %c2_i32_22 = arith.constant 2 : i32
      %c0_i32_23 = arith.constant 0 : i32
      %32 = tpu.memref_slice %arg5[%31, %c0_i32_23] : memref<256x128xf32, #tpu.memory_space<any>> -> memref<1x128xf32, #tpu.memory_space<any>>
      %c2_i32_24 = arith.constant 2 : i32
      %c0_i32_25 = arith.constant 0 : i32
      %33 = tpu.memref_slice %arg10[%c2_i32_24, %c0_i32_25] : memref<8x128xf32, #tpu.memory_space<vmem>> -> memref<1x128xf32, #tpu.memory_space<vmem>>
      %34 = tpu.memref_slice %arg12[%c2_i32_22] : memref<8x!tpu.dma_semaphore, #tpu.memory_space<semaphore_mem>> -> memref<1x!tpu.dma_semaphore, #tpu.memory_space<semaphore_mem>>
      %35 = tpu.memref_squeeze %34 : memref<1x!tpu.dma_semaphore, #tpu.memory_space<semaphore_mem>> -> memref<!tpu.dma_semaphore, #tpu.memory_space<semaphore_mem>>
      tpu.enqueue_dma source(%32 : memref<1x128xf32, #tpu.memory_space<any>>) target(%33 : memref<1x128xf32, #tpu.memory_space<vmem>>) target_semaphore(%35 : memref<!tpu.dma_semaphore, #tpu.memory_space<semaphore_mem>>)
      %c3_i32 = arith.constant 3 : i32
      %36 = arith.addi %14, %c3_i32 : i32
      %37 = arith.index_cast %36 : i32 to index
      %38 = memref.load %arg2[%37] : memref<16xi32, #tpu.memory_space<smem>>
      %c3_i32_26 = arith.constant 3 : i32
      %c0_i32_27 = arith.constant 0 : i32
      %39 = tpu.memref_slice %arg5[%38, %c0_i32_27] : memref<256x128xf32, #tpu.memory_space<any>> -> memref<1x128xf32, #tpu.memory_space<any>>
      %c3_i32_28 = arith.constant 3 : i32
      %c0_i32_29 = arith.constant 0 : i32
      %40 = tpu.memref_slice %arg10[%c3_i32_28, %c0_i32_29] : memref<8x128xf32, #tpu.memory_space<vmem>> -> memref<1x128xf32, #tpu.memory_space<vmem>>
      %41 = tpu.memref_slice %arg12[%c3_i32_26] : memref<8x!tpu.dma_semaphore, #tpu.memory_space<semaphore_mem>> -> memref<1x!tpu.dma_semaphore, #tpu.memory_space<semaphore_mem>>
      %42 = tpu.memref_squeeze %41 : memref<1x!tpu.dma_semaphore, #tpu.memory_space<semaphore_mem>> -> memref<!tpu.dma_semaphore, #tpu.memory_space<semaphore_mem>>
      tpu.enqueue_dma source(%39 : memref<1x128xf32, #tpu.memory_space<any>>) target(%40 : memref<1x128xf32, #tpu.memory_space<vmem>>) target_semaphore(%42 : memref<!tpu.dma_semaphore, #tpu.memory_space<semaphore_mem>>)
      %c4_i32 = arith.constant 4 : i32
      %43 = arith.addi %14, %c4_i32 : i32
      %44 = arith.index_cast %43 : i32 to index
      %45 = memref.load %arg2[%44] : memref<16xi32, #tpu.memory_space<smem>>
      %c4_i32_30 = arith.constant 4 : i32
      %c0_i32_31 = arith.constant 0 : i32
      %46 = tpu.memref_slice %arg5[%45, %c0_i32_31] : memref<256x128xf32, #tpu.memory_space<any>> -> memref<1x128xf32, #tpu.memory_space<any>>
      %c4_i32_32 = arith.constant 4 : i32
      %c0_i32_33 = arith.constant 0 : i32
      %47 = tpu.memref_slice %arg10[%c4_i32_32, %c0_i32_33] : memref<8x128xf32, #tpu.memory_space<vmem>> -> memref<1x128xf32, #tpu.memory_space<vmem>>
      %48 = tpu.memref_slice %arg12[%c4_i32_30] : memref<8x!tpu.dma_semaphore, #tpu.memory_space<semaphore_mem>> -> memref<1x!tpu.dma_semaphore, #tpu.memory_space<semaphore_mem>>
      %49 = tpu.memref_squeeze %48 : memref<1x!tpu.dma_semaphore, #tpu.memory_space<semaphore_mem>> -> memref<!tpu.dma_semaphore, #tpu.memory_space<semaphore_mem>>
      tpu.enqueue_dma source(%46 : memref<1x128xf32, #tpu.memory_space<any>>) target(%47 : memref<1x128xf32, #tpu.memory_space<vmem>>) target_semaphore(%49 : memref<!tpu.dma_semaphore, #tpu.memory_space<semaphore_mem>>)
      %c5_i32 = arith.constant 5 : i32
      %50 = arith.addi %14, %c5_i32 : i32
      %51 = arith.index_cast %50 : i32 to index
      %52 = memref.load %arg2[%51] : memref<16xi32, #tpu.memory_space<smem>>
      %c5_i32_34 = arith.constant 5 : i32
      %c0_i32_35 = arith.constant 0 : i32
      %53 = tpu.memref_slice %arg5[%52, %c0_i32_35] : memref<256x128xf32, #tpu.memory_space<any>> -> memref<1x128xf32, #tpu.memory_space<any>>
      %c5_i32_36 = arith.constant 5 : i32
      %c0_i32_37 = arith.constant 0 : i32
      %54 = tpu.memref_slice %arg10[%c5_i32_36, %c0_i32_37] : memref<8x128xf32, #tpu.memory_space<vmem>> -> memref<1x128xf32, #tpu.memory_space<vmem>>
      %55 = tpu.memref_slice %arg12[%c5_i32_34] : memref<8x!tpu.dma_semaphore, #tpu.memory_space<semaphore_mem>> -> memref<1x!tpu.dma_semaphore, #tpu.memory_space<semaphore_mem>>
      %56 = tpu.memref_squeeze %55 : memref<1x!tpu.dma_semaphore, #tpu.memory_space<semaphore_mem>> -> memref<!tpu.dma_semaphore, #tpu.memory_space<semaphore_mem>>
      tpu.enqueue_dma source(%53 : memref<1x128xf32, #tpu.memory_space<any>>) target(%54 : memref<1x128xf32, #tpu.memory_space<vmem>>) target_semaphore(%56 : memref<!tpu.dma_semaphore, #tpu.memory_space<semaphore_mem>>)
      %c6_i32 = arith.constant 6 : i32
      %57 = arith.addi %14, %c6_i32 : i32
      %58 = arith.index_cast %57 : i32 to index
      %59 = memref.load %arg2[%58] : memref<16xi32, #tpu.memory_space<smem>>
      %c6_i32_38 = arith.constant 6 : i32
      %c0_i32_39 = arith.constant 0 : i32
      %60 = tpu.memref_slice %arg5[%59, %c0_i32_39] : memref<256x128xf32, #tpu.memory_space<any>> -> memref<1x128xf32, #tpu.memory_space<any>>
      %c6_i32_40 = arith.constant 6 : i32
      %c0_i32_41 = arith.constant 0 : i32
      %61 = tpu.memref_slice %arg10[%c6_i32_40, %c0_i32_41] : memref<8x128xf32, #tpu.memory_space<vmem>> -> memref<1x128xf32, #tpu.memory_space<vmem>>
      %62 = tpu.memref_slice %arg12[%c6_i32_38] : memref<8x!tpu.dma_semaphore, #tpu.memory_space<semaphore_mem>> -> memref<1x!tpu.dma_semaphore, #tpu.memory_space<semaphore_mem>>
      %63 = tpu.memref_squeeze %62 : memref<1x!tpu.dma_semaphore, #tpu.memory_space<semaphore_mem>> -> memref<!tpu.dma_semaphore, #tpu.memory_space<semaphore_mem>>
      tpu.enqueue_dma source(%60 : memref<1x128xf32, #tpu.memory_space<any>>) target(%61 : memref<1x128xf32, #tpu.memory_space<vmem>>) target_semaphore(%63 : memref<!tpu.dma_semaphore, #tpu.memory_space<semaphore_mem>>)
      %c7_i32 = arith.constant 7 : i32
      %64 = arith.addi %14, %c7_i32 : i32
      %65 = arith.index_cast %64 : i32 to index
      %66 = memref.load %arg2[%65] : memref<16xi32, #tpu.memory_space<smem>>
      %c7_i32_42 = arith.constant 7 : i32
      %c0_i32_43 = arith.constant 0 : i32
      %67 = tpu.memref_slice %arg5[%66, %c0_i32_43] : memref<256x128xf32, #tpu.memory_space<any>> -> memref<1x128xf32, #tpu.memory_space<any>>
      %c7_i32_44 = arith.constant 7 : i32
      %c0_i32_45 = arith.constant 0 : i32
      %68 = tpu.memref_slice %arg10[%c7_i32_44, %c0_i32_45] : memref<8x128xf32, #tpu.memory_space<vmem>> -> memref<1x128xf32, #tpu.memory_space<vmem>>
      %69 = tpu.memref_slice %arg12[%c7_i32_42] : memref<8x!tpu.dma_semaphore, #tpu.memory_space<semaphore_mem>> -> memref<1x!tpu.dma_semaphore, #tpu.memory_space<semaphore_mem>>
      %70 = tpu.memref_squeeze %69 : memref<1x!tpu.dma_semaphore, #tpu.memory_space<semaphore_mem>> -> memref<!tpu.dma_semaphore, #tpu.memory_space<semaphore_mem>>
      tpu.enqueue_dma source(%67 : memref<1x128xf32, #tpu.memory_space<any>>) target(%68 : memref<1x128xf32, #tpu.memory_space<vmem>>) target_semaphore(%70 : memref<!tpu.dma_semaphore, #tpu.memory_space<semaphore_mem>>)
    } else {
    }
    %c0 = arith.constant 0 : index
    %c0_1 = arith.constant 0 : index
    %3 = vector.load %arg11[%c0, %c0_1] : memref<8x128xf32, #tpu.memory_space<vmem>>, vector<8x128xf32>
    %c0_2 = arith.constant 0 : index
    %c0_3 = arith.constant 0 : index
    %4 = vector.load %arg3[%c0_2, %c0_3] : memref<8x128xbf16, #tpu.memory_space<vmem>>, vector<8x128xbf16>
    %c0_4 = arith.constant 0 : index
    %c0_5 = arith.constant 0 : index
    %5 = vector.load %arg4[%c0_4, %c0_5] : memref<128x128xbf16, #tpu.memory_space<vmem>>, vector<128x128xbf16>
    %cst = arith.constant dense<0.000000e+00> : vector<8x128xf32>
    %6 = tpu.matmul %4, %5, %cst {dimension_numbers = #tpu.dot_dimension_numbers<[1], [0], [0], [1], [0, 0, 1, 1], [], []>} : vector<8x128xbf16>, vector<128x128xbf16>, vector<8x128xf32> -> vector<8x128xf32>
    %7 = arith.addf %3, %6 : vector<8x128xf32>
    %c0_6 = arith.constant 0 : index
    %c0_7 = arith.constant 0 : index
    %8 = vector.load %arg11[%c0_6, %c0_7] : memref<8x128xf32, #tpu.memory_space<vmem>>, vector<8x128xf32>
    tpu.vector_store %arg11[%c0_6, %c0_7], %7 {strides = array<i32>} : memref<8x128xf32, #tpu.memory_space<vmem>>, vector<8x128xf32>,
    %c1_i32 = arith.constant 1 : i32
    %9 = arith.cmpi eq, %arg1, %c1_i32 : i32
    %10 = arith.extui %9 : i1 to i32
    %c0_i32_8 = arith.constant 0 : i32
    %11 = arith.cmpi ne, %10, %c0_i32_8 : i32
    scf.if %11 {
      %c0_i32_9 = arith.constant 0 : i32
      %c0_i32_10 = arith.constant 0 : i32
      %c0_i32_11 = arith.constant 0 : i32
      %12 = tpu.memref_slice %arg5[%c0_i32_10, %c0_i32_11] : memref<256x128xf32, #tpu.memory_space<any>> -> memref<1x128xf32, #tpu.memory_space<any>>
      %c0_i32_12 = arith.constant 0 : i32
      %c0_i32_13 = arith.constant 0 : i32
      %13 = tpu.memref_slice %arg10[%c0_i32_12, %c0_i32_13] : memref<8x128xf32, #tpu.memory_space<vmem>> -> memref<1x128xf32, #tpu.memory_space<vmem>>
      %14 = tpu.memref_slice %arg12[%c0_i32_9] : memref<8x!tpu.dma_semaphore, #tpu.memory_space<semaphore_mem>> -> memref<1x!tpu.dma_semaphore, #tpu.memory_space<semaphore_mem>>
      %15 = tpu.memref_squeeze %14 : memref<1x!tpu.dma_semaphore, #tpu.memory_space<semaphore_mem>> -> memref<!tpu.dma_semaphore, #tpu.memory_space<semaphore_mem>>
      tpu.wait_dma2 semaphore(%15 : memref<!tpu.dma_semaphore, #tpu.memory_space<semaphore_mem>>) src(%12 : memref<1x128xf32, #tpu.memory_space<any>>) dst(%13 : memref<1x128xf32, #tpu.memory_space<vmem>>)
      %c1_i32_14 = arith.constant 1 : i32
      %c0_i32_15 = arith.constant 0 : i32
      %c0_i32_16 = arith.constant 0 : i32
      %16 = tpu.memref_slice %arg5[%c0_i32_15, %c0_i32_16] : memref<256x128xf32, #tpu.memory_space<any>> -> memref<1x128xf32, #tpu.memory_space<any>>
      %c1_i32_17 = arith.constant 1 : i32
      %c0_i32_18 = arith.constant 0 : i32
      %17 = tpu.memref_slice %arg10[%c1_i32_17, %c0_i32_18] : memref<8x128xf32, #tpu.memory_space<vmem>> -> memref<1x128xf32, #tpu.memory_space<vmem>>
      %18 = tpu.memref_slice %arg12[%c1_i32_14] : memref<8x!tpu.dma_semaphore, #tpu.memory_space<semaphore_mem>> -> memref<1x!tpu.dma_semaphore, #tpu.memory_space<semaphore_mem>>
      %19 = tpu.memref_squeeze %18 : memref<1x!tpu.dma_semaphore, #tpu.memory_space<semaphore_mem>> -> memref<!tpu.dma_semaphore, #tpu.memory_space<semaphore_mem>>
      tpu.wait_dma2 semaphore(%19 : memref<!tpu.dma_semaphore, #tpu.memory_space<semaphore_mem>>) src(%16 : memref<1x128xf32, #tpu.memory_space<any>>) dst(%17 : memref<1x128xf32, #tpu.memory_space<vmem>>)
      %c2_i32 = arith.constant 2 : i32
      %c0_i32_19 = arith.constant 0 : i32
      %c0_i32_20 = arith.constant 0 : i32
      %20 = tpu.memref_slice %arg5[%c0_i32_19, %c0_i32_20] : memref<256x128xf32, #tpu.memory_space<any>> -> memref<1x128xf32, #tpu.memory_space<any>>
      %c2_i32_21 = arith.constant 2 : i32
      %c0_i32_22 = arith.constant 0 : i32
      %21 = tpu.memref_slice %arg10[%c2_i32_21, %c0_i32_22] : memref<8x128xf32, #tpu.memory_space<vmem>> -> memref<1x128xf32, #tpu.memory_space<vmem>>
      %22 = tpu.memref_slice %arg12[%c2_i32] : memref<8x!tpu.dma_semaphore, #tpu.memory_space<semaphore_mem>> -> memref<1x!tpu.dma_semaphore, #tpu.memory_space<semaphore_mem>>
      %23 = tpu.memref_squeeze %22 : memref<1x!tpu.dma_semaphore, #tpu.memory_space<semaphore_mem>> -> memref<!tpu.dma_semaphore, #tpu.memory_space<semaphore_mem>>
      tpu.wait_dma2 semaphore(%23 : memref<!tpu.dma_semaphore, #tpu.memory_space<semaphore_mem>>) src(%20 : memref<1x128xf32, #tpu.memory_space<any>>) dst(%21 : memref<1x128xf32, #tpu.memory_space<vmem>>)
      %c3_i32 = arith.constant 3 : i32
      %c0_i32_23 = arith.constant 0 : i32
      %c0_i32_24 = arith.constant 0 : i32
      %24 = tpu.memref_slice %arg5[%c0_i32_23, %c0_i32_24] : memref<256x128xf32, #tpu.memory_space<any>> -> memref<1x128xf32, #tpu.memory_space<any>>
      %c3_i32_25 = arith.constant 3 : i32
      %c0_i32_26 = arith.constant 0 : i32
      %25 = tpu.memref_slice %arg10[%c3_i32_25, %c0_i32_26] : memref<8x128xf32, #tpu.memory_space<vmem>> -> memref<1x128xf32, #tpu.memory_space<vmem>>
      %26 = tpu.memref_slice %arg12[%c3_i32] : memref<8x!tpu.dma_semaphore, #tpu.memory_space<semaphore_mem>> -> memref<1x!tpu.dma_semaphore, #tpu.memory_space<semaphore_mem>>
      %27 = tpu.memref_squeeze %26 : memref<1x!tpu.dma_semaphore, #tpu.memory_space<semaphore_mem>> -> memref<!tpu.dma_semaphore, #tpu.memory_space<semaphore_mem>>
      tpu.wait_dma2 semaphore(%27 : memref<!tpu.dma_semaphore, #tpu.memory_space<semaphore_mem>>) src(%24 : memref<1x128xf32, #tpu.memory_space<any>>) dst(%25 : memref<1x128xf32, #tpu.memory_space<vmem>>)
      %c4_i32 = arith.constant 4 : i32
      %c0_i32_27 = arith.constant 0 : i32
      %c0_i32_28 = arith.constant 0 : i32
      %28 = tpu.memref_slice %arg5[%c0_i32_27, %c0_i32_28] : memref<256x128xf32, #tpu.memory_space<any>> -> memref<1x128xf32, #tpu.memory_space<any>>
      %c4_i32_29 = arith.constant 4 : i32
      %c0_i32_30 = arith.constant 0 : i32
      %29 = tpu.memref_slice %arg10[%c4_i32_29, %c0_i32_30] : memref<8x128xf32, #tpu.memory_space<vmem>> -> memref<1x128xf32, #tpu.memory_space<vmem>>
      %30 = tpu.memref_slice %arg12[%c4_i32] : memref<8x!tpu.dma_semaphore, #tpu.memory_space<semaphore_mem>> -> memref<1x!tpu.dma_semaphore, #tpu.memory_space<semaphore_mem>>
      %31 = tpu.memref_squeeze %30 : memref<1x!tpu.dma_semaphore, #tpu.memory_space<semaphore_mem>> -> memref<!tpu.dma_semaphore, #tpu.memory_space<semaphore_mem>>
      tpu.wait_dma2 semaphore(%31 : memref<!tpu.dma_semaphore, #tpu.memory_space<semaphore_mem>>) src(%28 : memref<1x128xf32, #tpu.memory_space<any>>) dst(%29 : memref<1x128xf32, #tpu.memory_space<vmem>>)
      %c5_i32 = arith.constant 5 : i32
      %c0_i32_31 = arith.constant 0 : i32
      %c0_i32_32 = arith.constant 0 : i32
      %32 = tpu.memref_slice %arg5[%c0_i32_31, %c0_i32_32] : memref<256x128xf32, #tpu.memory_space<any>> -> memref<1x128xf32, #tpu.memory_space<any>>
      %c5_i32_33 = arith.constant 5 : i32
      %c0_i32_34 = arith.constant 0 : i32
      %33 = tpu.memref_slice %arg10[%c5_i32_33, %c0_i32_34] : memref<8x128xf32, #tpu.memory_space<vmem>> -> memref<1x128xf32, #tpu.memory_space<vmem>>
      %34 = tpu.memref_slice %arg12[%c5_i32] : memref<8x!tpu.dma_semaphore, #tpu.memory_space<semaphore_mem>> -> memref<1x!tpu.dma_semaphore, #tpu.memory_space<semaphore_mem>>
      %35 = tpu.memref_squeeze %34 : memref<1x!tpu.dma_semaphore, #tpu.memory_space<semaphore_mem>> -> memref<!tpu.dma_semaphore, #tpu.memory_space<semaphore_mem>>
      tpu.wait_dma2 semaphore(%35 : memref<!tpu.dma_semaphore, #tpu.memory_space<semaphore_mem>>) src(%32 : memref<1x128xf32, #tpu.memory_space<any>>) dst(%33 : memref<1x128xf32, #tpu.memory_space<vmem>>)
      %c6_i32 = arith.constant 6 : i32
      %c0_i32_35 = arith.constant 0 : i32
      %c0_i32_36 = arith.constant 0 : i32
      %36 = tpu.memref_slice %arg5[%c0_i32_35, %c0_i32_36] : memref<256x128xf32, #tpu.memory_space<any>> -> memref<1x128xf32, #tpu.memory_space<any>>
      %c6_i32_37 = arith.constant 6 : i32
      %c0_i32_38 = arith.constant 0 : i32
      %37 = tpu.memref_slice %arg10[%c6_i32_37, %c0_i32_38] : memref<8x128xf32, #tpu.memory_space<vmem>> -> memref<1x128xf32, #tpu.memory_space<vmem>>
      %38 = tpu.memref_slice %arg12[%c6_i32] : memref<8x!tpu.dma_semaphore, #tpu.memory_space<semaphore_mem>> -> memref<1x!tpu.dma_semaphore, #tpu.memory_space<semaphore_mem>>
      %39 = tpu.memref_squeeze %38 : memref<1x!tpu.dma_semaphore, #tpu.memory_space<semaphore_mem>> -> memref<!tpu.dma_semaphore, #tpu.memory_space<semaphore_mem>>
      tpu.wait_dma2 semaphore(%39 : memref<!tpu.dma_semaphore, #tpu.memory_space<semaphore_mem>>) src(%36 : memref<1x128xf32, #tpu.memory_space<any>>) dst(%37 : memref<1x128xf32, #tpu.memory_space<vmem>>)
      %c7_i32 = arith.constant 7 : i32
      %c0_i32_39 = arith.constant 0 : i32
      %c0_i32_40 = arith.constant 0 : i32
      %40 = tpu.memref_slice %arg5[%c0_i32_39, %c0_i32_40] : memref<256x128xf32, #tpu.memory_space<any>> -> memref<1x128xf32, #tpu.memory_space<any>>
      %c7_i32_41 = arith.constant 7 : i32
      %c0_i32_42 = arith.constant 0 : i32
      %41 = tpu.memref_slice %arg10[%c7_i32_41, %c0_i32_42] : memref<8x128xf32, #tpu.memory_space<vmem>> -> memref<1x128xf32, #tpu.memory_space<vmem>>
      %42 = tpu.memref_slice %arg12[%c7_i32] : memref<8x!tpu.dma_semaphore, #tpu.memory_space<semaphore_mem>> -> memref<1x!tpu.dma_semaphore, #tpu.memory_space<semaphore_mem>>
      %43 = tpu.memref_squeeze %42 : memref<1x!tpu.dma_semaphore, #tpu.memory_space<semaphore_mem>> -> memref<!tpu.dma_semaphore, #tpu.memory_space<semaphore_mem>>
      tpu.wait_dma2 semaphore(%43 : memref<!tpu.dma_semaphore, #tpu.memory_space<semaphore_mem>>) src(%40 : memref<1x128xf32, #tpu.memory_space<any>>) dst(%41 : memref<1x128xf32, #tpu.memory_space<vmem>>)
      %c0_43 = arith.constant 0 : index
      %c0_44 = arith.constant 0 : index
      %44 = vector.load %arg10[%c0_43, %c0_44] : memref<8x128xf32, #tpu.memory_space<vmem>>, vector<8x128xf32>
      %45 = arith.truncf %44 : vector<8x128xf32> to vector<8x128xbf16>
      %c0_45 = arith.constant 0 : index
      %c0_46 = arith.constant 0 : index
      %46 = vector.load %arg11[%c0_45, %c0_46] : memref<8x128xf32, #tpu.memory_space<vmem>>, vector<8x128xf32>
      %47 = arith.truncf %46 : vector<8x128xf32> to vector<8x128xbf16>
      %c0_47 = arith.constant 0 : index
      %c0_48 = arith.constant 0 : index
      %48 = vector.load %arg6[%c0_47, %c0_48] : memref<128x128xbf16, #tpu.memory_space<vmem>>, vector<128x128xbf16>
      %cst_49 = arith.constant dense<0.000000e+00> : vector<8x128xf32>
      %49 = tpu.matmul %45, %48, %cst_49 {dimension_numbers = #tpu.dot_dimension_numbers<[1], [1], [0], [0], [0, 0, 1, 0], [], []>} : vector<8x128xbf16>, vector<128x128xbf16>, vector<8x128xf32> -> vector<8x128xf32>
      %c0_50 = arith.constant 0 : index
      %c0_51 = arith.constant 0 : index
      %50 = vector.load %arg7[%c0_50, %c0_51] : memref<128x128xbf16, #tpu.memory_space<vmem>>, vector<128x128xbf16>
      %cst_52 = arith.constant dense<0.000000e+00> : vector<8x128xf32>
      %51 = tpu.matmul %47, %50, %cst_52 {dimension_numbers = #tpu.dot_dimension_numbers<[1], [1], [0], [0], [0, 0, 1, 0], [], []>} : vector<8x128xbf16>, vector<128x128xbf16>, vector<8x128xf32> -> vector<8x128xf32>
      %52 = arith.addf %49, %51 : vector<8x128xf32>
      %cst_53 = arith.constant 0.000000e+00 : f32
      %53 = vector.broadcast %cst_53 : f32 to vector<8x128xf32>
      %54 = arith.maximumf %52, %53 : vector<8x128xf32>
      %55 = arith.truncf %54 : vector<8x128xf32> to vector<8x128xbf16>
      %c0_54 = arith.constant 0 : index
      %c0_55 = arith.constant 0 : index
      %56 = vector.load %arg8[%c0_54, %c0_55] : memref<128x128xbf16, #tpu.memory_space<vmem>>, vector<128x128xbf16>
      %cst_56 = arith.constant dense<0.000000e+00> : vector<8x128xf32>
      %57 = tpu.matmul %55, %56, %cst_56 {dimension_numbers = #tpu.dot_dimension_numbers<[1], [1], [0], [0], [0, 0, 1, 0], [], []>} : vector<8x128xbf16>, vector<128x128xbf16>, vector<8x128xf32> -> vector<8x128xf32>
      %c0_57 = arith.constant 0 : index
      %c0_58 = arith.constant 0 : index
      %58 = vector.load %arg9[%c0_57, %c0_58] : memref<8x128xf32, #tpu.memory_space<vmem>>, vector<8x128xf32>
      tpu.vector_store %arg9[%c0_57, %c0_58], %57 {strides = array<i32>} : memref<8x128xf32, #tpu.memory_space<vmem>>, vector<8x128xf32>,
    } else {
    }
    return
  }
  func.func @transform_0(%arg0: i32, %arg1: i32, %arg2: memref<16xi32, #tpu.memory_space<smem>>) -> (i32, i32) {
    %c0_i32 = arith.constant 0 : i32
    return %arg0, %arg1 : i32, i32
  }
  func.func @transform_1(%arg0: i32, %arg1: i32, %arg2: memref<16xi32, #tpu.memory_space<smem>>) -> (i32, i32) {
    %c0_i32 = arith.constant 0 : i32
    %c0_i32_0 = arith.constant 0 : i32
    return %arg1, %c0_i32 : i32, i32
  }
  func.func @transform_3(%arg0: i32, %arg1: i32, %arg2: memref<16xi32, #tpu.memory_space<smem>>) -> (i32, i32) {
    %c0_i32 = arith.constant 0 : i32
    %c0_i32_0 = arith.constant 0 : i32
    %c0_i32_1 = arith.constant 0 : i32
    return %c0_i32, %c0_i32_0 : i32, i32
  }
  func.func @transform_4(%arg0: i32, %arg1: i32, %arg2: memref<16xi32, #tpu.memory_space<smem>>) -> (i32, i32) {
    %c0_i32 = arith.constant 0 : i32
    %c0_i32_0 = arith.constant 0 : i32
    %c0_i32_1 = arith.constant 0 : i32
    return %c0_i32, %c0_i32_0 : i32, i32
  }
  func.func @transform_5(%arg0: i32, %arg1: i32, %arg2: memref<16xi32, #tpu.memory_space<smem>>) -> (i32, i32) {
    %c0_i32 = arith.constant 0 : i32
    %c0_i32_0 = arith.constant 0 : i32
    %c0_i32_1 = arith.constant 0 : i32
    return %c0_i32, %c0_i32_0 : i32, i32
  }
  func.func @transform_6(%arg0: i32, %arg1: i32, %arg2: memref<16xi32, #tpu.memory_space<smem>>) -> (i32, i32) {
    %c0_i32 = arith.constant 0 : i32
    %c0_i32_0 = arith.constant 0 : i32
    return %arg0, %c0_i32 : i32, i32
  }
}

</mosaic_0001>

<bundles_post_ra>
// kernel: tpu_custom_call.1
= control target key start
LH: loop header
LB: loop body
LE: loop exit
PB: predicated region body
PF: predicated region fallthrough
CT: control target
= control target key end

     0   :  { %s2056_s24 = smov [#allocation6]   ;;  %s2622_s0 = inlined_call_operand.hbm [shape: s32[16], index: 0, kind: input, shape index: {}]   ;;  %s2623_s1 = inlined_call_operand.hbm [shape: bf16[16,256], index: 1, kind: input, shape index: {}]   ;;  %s2624_s2 = inlined_call_operand.hbm [shape: bf16[256,128], index: 2, kind: input, shape index: {}]   ;;  %s2625_s3 = inlined_call_operand.hbm [shape: f32[256,128], index: 3, kind: input, shape index: {}]   ;;  %s2626_s4 = inlined_call_operand.hbm [shape: bf16[128,128], index: 4, kind: input, shape index: {}]   ;;  %s2627_s5 = inlined_call_operand.hbm [shape: bf16[128,128], index: 5, kind: input, shape index: {}]   ;;  %s2628_s6 = inlined_call_operand.hbm [shape: bf16[128,128], index: 6, kind: input, shape index: {}]   ;;  %s2629_s7 = inlined_call_operand.hbm [shape: f32[16,128], index: 7, kind: output, shape index: {}]  }
   0x1   :  { %2651 = sst [smem:[#allocation62_spill]] %s2623_s1 }
   0x2   :  { %2652 = sst [smem:[#allocation63_spill]] %s2624_s2 }
   0x3   :  { %2653 = sst [smem:[#allocation64_spill]] %s2625_s3 }
   0x4   :  { %2654 = sst [smem:[#allocation65_spill]] %s2626_s4 }
   0x5   :  { %2655 = sst [smem:[#allocation66_spill]] %s2627_s5 }
   0x6   :  { %2656 = sst [smem:[#allocation67_spill]] %s2628_s6 }
   0x7   :  { %2657 = sst [smem:[#allocation68_spill]] %s2629_s7 }
   0x8   :  { %13 = dma.hbm_to_smem %s2622_s0, 16, %s2056_s24, [#allocation5] }
   0x9   :  { %1962 = dma.done.wait [#allocation5], 16 }
   0xa   :  { %1963 = vsyncadd [#allocation5], 4294967280 }
   0xb   :  { %15 = sfence }
   0xc   :  { %16 = vsyncpa [#allocation8], 0 }
   0xd   :  { %18 = vsyncpa [#allocation8 + $0x1], 0 }
   0xe   :  { %19 = vsyncpa [#allocation11], 0 }
   0xf   :  { %21 = vsyncpa [#allocation11 + $0x1], 0 }
  0x10   :  { %22 = vsyncpa [#allocation14], 0 }
  0x11   :  { %23 = vsyncpa [#allocation9], 0 }
  0x12   :  { %25 = vsyncpa [#allocation9 + $0x1], 0  ;;  %s2121_s27 = smov 0   ;;  %s2123_s28 = smov 0  }
  0x13   :  { %s2125_s29 = smov 0   ;;  %s2127_s30 = smov 0  }
  0x14   :  { %s2129_s8 = smov 0   ;;  %s2131_s0 = smov 0  }
  0x15   :  { %s2133_s9 = smov 0   ;;  %s2135_s10 = smov 0  }
  0x16   :  { %s2137_s11 = smov 0   ;;  %s2139_s12 = smov 0  }
  0x17   :  { %s2141_s13 = smov 0   ;;  %s2143_s14 = smov 0  }
  0x18   :  { %s2145_s15 = smov 0   ;;  %s2147_s16 = smov 0  }
  0x19 LB: > { %2658 = sst [smem:[#allocation49_spill]] %s2002_s27  ;;  %s2190_s17 = sadd.s32 4294967295, %s2054_s16   ;;  %s2054_s16 = sphi %s2147_s16, %s31_s16   ;;  %s2050_s15 = sphi %s2145_s15, %s2719_s15   ;;  %s2046_s14 = sphi %s2143_s14, %s2718_s14   ;;  %s2042_s13 = sphi %s2141_s13, %s2717_s13   ;;  %s2038_s12 = sphi %s2139_s12, %s2716_s12   ;;  %s2034_s11 = sphi %s2137_s11, %s2715_s11   ;;  %s2030_s10 = sphi %s2135_s10, %s2728_s10   ;;  %s2026_s9 = sphi %s2133_s9, %s2727_s9   ;;  %s2022_s0 = sphi %s2131_s0, %s2726_s0   ;;  %s2018_s8 = sphi %s2129_s8, %s2725_s8   ;;  %s2014_s30 = sphi %s2127_s30, %s2724_s30   ;;  %s2010_s29 = sphi %s2125_s29, %s2723_s29   ;;  %s2006_s28 = sphi %s2123_s28, %s2722_s28   ;;  %s2002_s27 = sphi %s2121_s27, %s2721_s27  }
  0x1a   : > { %2659 = sst [smem:[#allocation50_spill]] %s2006_s28  ;;  %s1161_s18 = sadd.s32 4294967294, %s2054_s16  }
  0x1b   : > { %2660 = sst [smem:[#allocation51_spill]] %s2034_s11  ;;  %p2644_p0 = scmp.eq.s32.totalorder %s2190_s17, 0 }
  0x1c   : > { %2661 = sst [smem:[#allocation52_spill]] %s2038_s12  ;;  %p91_p1 = scmp.ne.s32.totalorder %s2018_s8, %s2014_s30 }
  0x1d   : > { %2662 = sst [smem:[#allocation53_spill]] %s2042_s13  ;;  %p177_p2 = scmp.ne.s32.totalorder %s2010_s29, %s2006_s28 }
  0x1e   : > { %2663 = sst [smem:[#allocation54_spill]] %s2046_s14  ;;  %p178_p3 = scmp.eq.s32.totalorder %s2190_s17, 3 }
  0x1f   : > { %2664 = sst [smem:[#allocation55_spill]] %s2050_s15  ;;  %p2200_p4 = por %p91_p1, %p2644_p0 }
  0x20   : > { %p183_p5 = scmp.ne.s32.totalorder %s2006_s28, %s2002_s27  ;;  %p2206_p6 = por %p178_p3, %p177_p2 }
  0x21   : > { %s2665_s19 = scalar_select %p2200_p4, 1, 0 }
  0x22   : > { %s2667_s20 = scalar_select %p2206_p6, 1, 0 }
  0x23   : > { %2666 = sst [smem:[#allocation56_spill]] %s2665_s19  ;;  %p184_p7 = scmp.eq.s32.totalorder %s1161_s18, 3 }
  0x24   : > { %2668 = sst [smem:[#allocation57_spill]] %s2667_s20  ;;  %p1162_p8 = scmp.ge.s32.totalorder %s2054_s16, 1 }
  0x25   : > { %p191_p9 = scmp.lt.s32.totalorder %s2054_s16, 5  ;;  %p2212_p10 = por %p184_p7, %p183_p5 }
  0x26   : > { %s2057_s23 = smov [#allocation12]   ;;  %s2058_s26 = smov [#allocation13]  }
  0x27   : > { %s2669_s21 = scalar_select %p2212_p10, 1, 0 }
  0x28   : > { %p2216_p11 = pnand %p1162_p8, %p191_p9  ;;  %s203_s24 = sshll.u32 %s2057_s23, 4  ;;  %s204_s24 = int_to_ptr.vmem [resolvable:$true] %s203_s24 }
  0x29   : > { %2670 = sst [smem:[#allocation58_spill]] %s2669_s21  ;;  %s216_s30 = sshll.u32 %s2058_s26, 4  ;;  %s217_s30 = int_to_ptr.vmem [resolvable:$true] %s216_s30 }
  0x2a   : > { %p1370_p12 = pneg %p2216_p11  ;;  %s1581_s18 = scalar_lea.vmem %s204_s24, 1024 }
  0x2b   : > { %p1582_p2 = scmp.ne.s32.totalorder %s204_s24, %s1581_s18  ;;  %p1589_p7 = scmp.lt.s32.totalorder %s204_s24, %s204_s24 }
  0x2c   : > { %p2224_p13 = pnand %p1370_p12, %p2644_p0  ;;  %p1590_p8 = scmp.lt.s32.totalorder %s1581_s18, %s1581_s18 }
  0x2e   : > { %p1572_p1 = pneg %p2224_p13  ;;  %p1591_p9 = por %p1590_p8, %p1589_p7 }
  0x30   : > { %p1584_p3 = pnand %p1582_p2, %p1572_p1 }
  0x32   : > { %p1585_p5 = pneg %p1584_p3 }
  0x34   : > { %p1592_p12 = pnand %p1591_p9, %p1585_p5 }
  0x36   : > { %1595 = shalt.err (!%p1592_p12)
}
  0x37   : > { %s2635_s23 = smov 64   ;;  %s2636_s21 = smov 4  }
  0x38   : > { %s2673_s4 = sld [smem:[#allocation65_spill]]  ;;  %s1607_s7 = scalar_lea.vmem %s217_s30, 1024 }
  0x39   : > { %p1608_p2 = scmp.ne.s32.totalorder %s217_s30, %s1607_s7  ;;  %p1615_p5 = scmp.lt.s32.totalorder %s217_s30, %s217_s30 }
  0x3a   : > { %p1616_p8 = scmp.lt.s32.totalorder %s1607_s7, %s1607_s7 }
  0x3b   : > { %p1610_p3 = pnand %p1608_p2, %p1572_p1 }
  0x3c   : > { %p1617_p9 = por %p1616_p8, %p1615_p5 }
  0x3d   : > { %p1611_p7 = pneg %p1610_p3 }
  0x3e   : > { %1373 = dma.hbm_to_vmem [thread:$0]  (!%p2224_p13), %s2673_s4, 1024, %s204_s24, [#allocation11], %s2635_s23, %s2635_s23, %s2636_s21  }
  0x3f   : > { %p1618_p12 = pnand %p1617_p9, %p1611_p7 }
  0x41   : > { %1621 = shalt.err (!%p1618_p12)
}
  0x42   : > { %s2674_s5 = sld [smem:[#allocation66_spill]]  ;;  %s2061_s27 = smov [#allocation15]  }
  0x43   : > { %s229_s24 = sshll.u32 %s2061_s27, 4  ;;  %s230_s24 = int_to_ptr.vmem [resolvable:$true] %s229_s24 }
  0x44   : > { %s1633_s26 = scalar_lea.vmem %s230_s24, 1024  ;;  %p1641_p5 = scmp.lt.s32.totalorder %s230_s24, %s230_s24 }
  0x45   : > { %p1634_p2 = scmp.ne.s32.totalorder %s230_s24, %s1633_s26  ;;  %p1642_p8 = scmp.lt.s32.totalorder %s1633_s26, %s1633_s26 }
  0x47   : > { %p1636_p3 = pnand %p1634_p2, %p1572_p1  ;;  %p1643_p9 = por %p1642_p8, %p1641_p5 }
  0x48   : > { %1376 = dma.hbm_to_vmem [thread:$0]  (!%p2224_p13), %s2674_s5, 1024, %s217_s30, [#allocation14], %s2635_s23, %s2635_s23, %s2636_s21  }
  0x49   : > { %p1637_p7 = pneg %p1636_p3 }
  0x4b   : > { %p1644_p12 = pnand %p1643_p9, %p1637_p7 }
  0x4d   : > { %1647 = shalt.err (!%p1644_p12)
}
  0x4e   : > { %s2675_s6 = sld [smem:[#allocation67_spill]]  ;;  %s40_s25 = sadd.s32 1, %s2046_s14 }
  0x4f   : > { %s43_s30 = sadd.s32 1, %s2050_s15  ;;  %p41_p1 = scmp.ge.s32.totalorder %s40_s25, 2 }
  0x50   : > { %s52_s18 = sadd.s32 1, %s2034_s11  ;;  %p59_p2 = scmp.ne.s32.totalorder %s2034_s11, %s2030_s10 }
  0x51   : > { %p60_p3 = scmp.eq.s32.totalorder %s2054_s16, 0  ;;  %s2730_s25 = smov (%p41_p1, %s40_s25), 0 }
  0x52   : > { %2676 = sst [smem:[#allocation59_spill]] %s2730_s25  ;;  %s2732_s30 = smov (!%p41_p1, %s43_s30), %s2050_s15 }
  0x53   : > { %s48_s27 = ssub.s32 %s2046_s14, %s2730_s25  ;;  %p45_p7 = scmp.ge.s32.totalorder %s2732_s30, 2 }
  0x54   : > { %1379 = dma.hbm_to_vmem [thread:$0]  (!%p2224_p13), %s2675_s6, 1024, %s230_s24, [#allocation14], %s2635_s23, %s2635_s23, %s2636_s21  }
  0x55   : > { %p2276_p13 = por %p60_p3, %p59_p2  ;;  %p65_p5 = scmp.ne.s32.totalorder %s2030_s10, %s2026_s9 }
  0x56   : > { %p76_p8 = scmp.eq.s32.totalorder %s48_s27, 0  ;;  %s78_s26 = sadd.s32 1, %s2022_s0 }
  0x57   : > { %s2734_s30 = smov (%p45_p7, %s2732_s30), 0  ;;  %p2287_p9 = por %p2644_p0, %p65_p5 }
  0x58   : > { %2678 = sst [smem:[#allocation60_spill]] %s2734_s30  ;;  %p85_p12 = scmp.ne.s32.totalorder %s2022_s0, %s2018_s8 }
  0x59   : > { %s47_s20 = ssub.s32 %s2050_s15, %s2734_s30  ;;  %s167_s23 = sadd.s32 1, %s2010_s29 }
  0x5a   : > { %s49_s21 = sor.u32 %s48_s27, %s47_s20  ;;  %p2298_p1 = por %p85_p12, %p60_p3 }
  0x5b   : > { %p50_p2 = scmp.eq.s32.totalorder %s49_s21, 0  ;;  %p165_p7 = scmp.eq.s32.totalorder %s47_s20, 0 }
  0x5c   : > { %s2303_s4 = scalar_select %p76_p8, %s2022_s0, %s78_s26  }
  0x5d   : > { %s2306_s5 = scalar_select %p50_p2, %s2034_s11, %s52_s18  }
  0x5e   : > { %s2309_s6 = scalar_select %p165_p7, %s2010_s29, %s167_s23  }
  0x5f   : > { %2681 = sst [smem:[#allocation61_spill]] %s2306_s5  ;;  %p1394_p5 = scmp.lt.s32.totalorder %s2054_s16, 4 }
  0x60   : > { %s243_s30 = sand.u32 1, %s2034_s11   ;;  %s1168_s27 = sshll.u32 %s2050_s15, 1 }
  0x61   : > { %s1167_s25 = sshll.u32 %s243_s30, 2  ;;  %s252_s3 = sadd.s32 %s2046_s14, %s1168_s27 }
  0x62   : > { %s247_s13 = scalar_lea.vmem [#allocation7], %s1167_s25  ;;  %s1169_s28 = sshll.u32 %s252_s3, 6 }
  0x63   : > { %s256_s12 = sshll.u32 %s247_s13, 4  ;;  %s2682_s1 = sld [smem:[#allocation62_spill]]  ;;  %s257_s12 = int_to_ptr.vmem [resolvable:$true] %s256_s12 }
  0x64   : > { %p2320_p3 = pnand %p1394_p5, %p2276_p13  ;;  %p2326_p8 = pnand %p1394_p5, %p2298_p1 }
  0x65   : > { %s263_s18 = sand.u32 1, %s2054_s16   ;;  %s244_s25 = scalar_lea.sflag [#allocation8], %s243_s30 }
  0x66   : > { %p1650_p12 = pneg %p2320_p3  ;;  %s1661_s3 = scalar_lea.vmem %s257_s12, 64 }
  0x67   : > { %p1662_p2 = scmp.ne.s32.totalorder %s257_s12, %s1661_s3 }
  0x69   : > { %s254_s20 = scalar_lea.hbm %s2682_s1, %s1169_s28  ;;  %p1664_p7 = pnand %p1662_p2, %p1650_p12 }
  0x6a   : > { %s2062_s28 = smov [#allocation7]  }
  0x6b   : > { %p1665_p0 = pneg %p1664_p7  ;;  %s1666_s13 = sshll.u32 %s2062_s28, 4  ;;  %s1667_s13 = int_to_ptr.vmem [resolvable:$false] %s1666_s13 }
  0x6c   : > { %s1668_s19 = scalar_lea.vmem %s1667_s13, 128  ;;  %p1669_p13 = scmp.lt.s32.totalorder %s257_s12, %s1667_s13 }
  0x6d   : > { %p1670_p10 = scmp.lt.s32.totalorder %s1668_s19, %s1661_s3 }
  0x6f   : > { %p1671_p6 = por %p1670_p10, %p1669_p13 }
  0x71   : > { %p1672_p4 = pnand %p1671_p6, %p1665_p0 }
  0x73   : > { %1675 = shalt.err (!%p1672_p4)
}
  0x74   : > { %1383 = dma.hbm_to_vmem [thread:$0]  (!%p2320_p3), %s254_s20, 64, %s257_s12, %s244_s25  }
  0x75   : > { %s265_s30 = sand.u32 1, %s2022_s0   ;;  %s1235_s9 = sshll.u32 %s2046_s14, 10 }
  0x76   : > { %s1170_s24 = sshll.u32 %s265_s30, 6  ;;  %s2685_s2 = sld [smem:[#allocation63_spill]] }
  0x77   : > { %s267_s1 = scalar_lea.vmem [#allocation10], %s1170_s24  ;;  %s264_s3 = scalar_lea.sflag [#allocation11], %s263_s18 }
  0x78   : > { %s274_s15 = sshll.u32 %s267_s1, 4  ;;  %p1678_p0 = pneg %p2326_p8  ;;  %s275_s15 = int_to_ptr.vmem [resolvable:$true] %s274_s15 }
  0x79   : > { %s1689_s13 = scalar_lea.vmem %s275_s15, 1024  ;;  %s2063_s26 = smov [#allocation10]  }
  0x7a   : > { %p1690_p4 = scmp.ne.s32.totalorder %s275_s15, %s1689_s13  ;;  %s1694_s19 = sshll.u32 %s2063_s26, 4  ;;  %s1695_s19 = int_to_ptr.vmem [resolvable:$false] %s1694_s19 }
  0x7b   : > { %s1696_s12 = scalar_lea.vmem %s1695_s19, 2048  ;;  %p1697_p1 = scmp.lt.s32.totalorder %s275_s15, %s1695_s19 }
  0x7c   : > { %s273_s28 = scalar_lea.hbm %s2685_s2, %s1235_s9  ;;  %p1692_p6 = pnand %p1690_p4, %p1678_p0 }
  0x7d   : > { %p1698_p5 = scmp.lt.s32.totalorder %s1696_s12, %s1689_s13 }
  0x7e   : > { %p1693_p10 = pneg %p1692_p6 }
  0x7f   : > { %p1699_p3 = por %p1698_p5, %p1697_p1 }
  0x81   : > { %p1700_p12 = pnand %p1699_p3, %p1693_p10 }
  0x83   : > { %1703 = shalt.err (!%p1700_p12)
}
  0x84   : > { %s2686_s1 = smov 4   ;;  %s2687_s20 = smov 64  }
  0x85   : > { %1386 = dma.hbm_to_vmem [thread:$0]  (!%p2326_p8), %s273_s28, 1024, %s275_s15, %s264_s3, %s2687_s20, %s2687_s20, %s2686_s1  }
  0x86   : > { %286 = sbr.rel (%p2216_p11) target bundleno = 1072 (0x430), region = 40  ;;  %s288_s18 = sand.u32 (!%p2216_p11), 1, %s2030_s10  }
  0x87   : > { %s2350_s25 = sshll.u32 (!%p2216_p11), %s288_s18, 2  ;;  %s289_s30 = scalar_lea.sflag (!%p2216_p11), [#allocation8], %s288_s18 }
  0x8b   : > { %1965 = dma.done.wait (%p2287_p9), %s289_s30, 64  }
  0x8c   : > { %1967 = vsyncadd (%p2287_p9), %s289_s30, 4294967232  ;;  %s2688_s23 = sld [smem:[#allocation56_spill]]  ;;  %s297_s15 = sand.u32 1, %s2190_s17  }
  0x8d   : > { %s299_s9 = sand.u32 1, %s2018_s8   ;;  %s298_s27 = scalar_lea.sflag [#allocation11], %s297_s15 }
  0x8e   : > { %s1175_s22 = sshll.u32 %s299_s9, 6 }
  0x8f   : > { %s2359_s21 = scalar_lea.vmem [#allocation10], %s1175_s22 }
  0x92   : > { %p2689_p11 = scmp.ne.s32.totalorder %s2688_s23, 0 }
  0x94   : > { %1969 = dma.done.wait (%p2689_p11), %s298_s27, 1024  }
  0x95   : > { %1971 = vsyncadd (%p2689_p11), %s298_s27, 4294966272  ;;  %p2690_p8 = scmp.eq.s32.totalorder %s2190_s17, 0 }
  0x97   : > { %1973 = dma.done.wait (%p2690_p8), [#allocation11], 1024   ;;  %p2691_p2 = pmov %p2690_p8 }
  0x99   : > { %1975 = vsyncadd (%p2691_p2), [#allocation11], 4294966272  ;;  %p2692_p9 = pmov %p2691_p2 }
  0x9a   : > { %p2693_p7 = pmov %p2691_p2 }
  0x9b   : > { %1977 = dma.done.wait (%p2692_p9), [#allocation14], 2048  }
  0x9c   : > { %1979 = vsyncadd (%p2693_p7), [#allocation14], 4294965248  ;;  %s2694_s7 = sld [smem:[#allocation50_spill]] }
  0x9d   : > { %s2695_s26 = sld [smem:[#allocation52_spill]] }
  0xa2   : > { %s2648_s28 = sand.u32 1, %s2694_s7  }
  0xa3   : > { %s2376_s3 = sshll.u32 %s2648_s28, 3  ;;  %p1180_p13 = scmp.ne.s32.totalorder %s2695_s26, 0 }
  0xa4   : > { %s2696_s19 = sld [smem:[#allocation53_spill]] (!%p1180_p13)  ;;  %s2064_s1 = smov (!%p1180_p13), [#allocation2]  }
  0xa5   : > { %350 = sbr.rel (%p1180_p13) target bundleno = 333 (0x14d), region = 64  ;;  %s363_s20 = sshll.u32 (!%p1180_p13), %s2064_s1, 4  ;;  %s2384_s20 = int_to_ptr.vmem [resolvable:$true] %s363_s20 }
  0xa6   : > { %s2066_s23 = smov (!%p1180_p13), [#allocation2 + $0x1]   ;;  %s2067_s26 = smov (!%p1180_p13), [#allocation2 + $0x2]  }
  0xa7   : > { %s380_s15 = sshll.u32 (!%p1180_p13), %s2066_s23, 4  ;;  %s2697_s13 = sld [smem:[#allocation64_spill]] (!%p1180_p13)  ;;  %s2390_s15 = int_to_ptr.vmem [resolvable:$true] %s380_s15 }
  0xaa   : > { %s2381_s12 = sshll.u32 %s2696_s19, 3  ;;  %v2065_v0 = vmov 0.0   ;;  %s397_s19 = sshll.u32 %s2067_s26, 4  ;;  %s2398_s19 = int_to_ptr.vmem [resolvable:$true] %s397_s19 }
  0xab   : > { %s353_s17 = sld [smem:[#allocation6 + %s2381_s12]]  ;;  %351 = vst [vmem:[#allocation3] sm:$0xff] %v2065_v0  ;;  %s367_s18 = sadd.s32 1, %s2381_s12 }
  0xac   : > { %s2387_s30 = sld [smem:[#allocation6 + %s367_s18]]  ;;  %s384_s9 = sadd.s32 2, %s2381_s12 }
  0xad   : > { %s2392_s22 = sld [smem:[#allocation6 + %s384_s9]]  ;;  %s401_s27 = sadd.s32 3, %s2381_s12 }
  0xae   : > { %s2698_s24 = smov %s2697_s13 }
  0xaf   : > { %s2403_s23 = scalar_lea.hbm %s2698_s24, 4096 }
  0xb1   : > { %s1182_s7 = sshll.u32 %s353_s17, 4 }
  0xb2   : > { %s355_s2 = scalar_lea.hbm %s2697_s13, %s1182_s7 }
  0xb3   : > { %s1704_s14 = scalar_lea.hbm %s355_s2, 16  ;;  %p1707_p4 = scmp.lt.s32.totalorder %s355_s2, %s2698_s24 }
  0xb4   : > { %p1705_p0 = scmp.ne.s32.totalorder %s355_s2, %s1704_s14  ;;  %p1708_p6 = scmp.lt.s32.totalorder %s2403_s23, %s1704_s14 }
  0xb6   : > { %p1709_p10 = por %p1708_p6, %p1707_p4 }
  0xb8   : > { %p1710_p1 = pnand %p1709_p10, %p1705_p0 }
  0xba   : > { %1713 = shalt.err (!%p1710_p1)  }
  0xbb   : > { %s1714_s28 = scalar_lea.vmem %s2384_s20, 16  ;;  %s2412_s13 = scalar_lea.vmem %s2384_s20, 128 }
  0xbc   : > { %p1715_p5 = scmp.ne.s32.totalorder %s2384_s20, %s1714_s28  ;;  %p1719_p3 = scmp.lt.s32.totalorder %s2384_s20, %s2384_s20 }
  0xbd   : > { %p1720_p12 = scmp.lt.s32.totalorder %s2412_s13, %s1714_s28 }
  0xbf   : > { %p1721_p11 = por %p1720_p12, %p1719_p3 }
  0xc1   : > { %p1722_p8 = pnand %p1721_p11, %p1715_p5 }
  0xc3   : > { %1725 = shalt.err (!%p1722_p8)  }
  0xc4   : > { %366 = dma.hbm_to_vmem [thread:$0]  %s355_s2, 16, %s2384_s20, [#allocation4] }
  0xc5   : > { %s1183_s5 = sshll.u32 %s2387_s30, 4  ;;  %s2419_s11 = sld [smem:[#allocation6 + %s401_s27]] }
  0xc6   : > { %s370_s7 = scalar_lea.hbm %s2698_s24, %s1183_s5  ;;  %s1184_s26 = sshll.u32 %s2392_s22, 4 }
  0xc7   : > { %s1726_s1 = scalar_lea.hbm %s370_s7, 16  ;;  %p1729_p9 = scmp.lt.s32.totalorder %s370_s7, %s2698_s24 }
  0xc8   : > { %p1727_p2 = scmp.ne.s32.totalorder %s370_s7, %s1726_s1  ;;  %p1730_p7 = scmp.lt.s32.totalorder %s2403_s23, %s1726_s1 }
  0xca   : > { %p1731_p13 = por %p1730_p7, %p1729_p9 }
  0xcc   : > { %p1732_p0 = pnand %p1731_p13, %p1727_p2 }
  0xce   : > { %1735 = shalt.err (!%p1732_p0)  }
  0xcf   : > { %s1736_s2 = scalar_lea.vmem %s2390_s15, 16  ;;  %p1741_p6 = scmp.lt.s32.totalorder %s2390_s15, %s2384_s20 }
  0xd0   : > { %p1737_p4 = scmp.ne.s32.totalorder %s2390_s15, %s1736_s2  ;;  %p1742_p10 = scmp.lt.s32.totalorder %s2412_s13, %s1736_s2 }
  0xd2   : > { %p1743_p1 = por %p1742_p10, %p1741_p6 }
  0xd4   : > { %p1744_p5 = pnand %p1743_p1, %p1737_p4 }
  0xd6   : > { %1747 = shalt.err (!%p1744_p5)  }
  0xd7   : > { %383 = dma.hbm_to_vmem [thread:$0]  %s370_s7, 16, %s2390_s15, [#allocation4 + $0x1] }
  0xd8   : > { %s387_s27 = scalar_lea.hbm %s2698_s24, %s1184_s26 }
  0xd9   : > { %s1748_s28 = scalar_lea.hbm %s387_s27, 16  ;;  %p1751_p12 = scmp.lt.s32.totalorder %s387_s27, %s2698_s24 }
  0xda   : > { %p1749_p3 = scmp.ne.s32.totalorder %s387_s27, %s1748_s28  ;;  %p1752_p11 = scmp.lt.s32.totalorder %s2403_s23, %s1748_s28 }
  0xdc   : > { %p1753_p8 = por %p1752_p11, %p1751_p12 }
  0xde   : > { %p1754_p2 = pnand %p1753_p8, %p1749_p3 }
  0xe0   : > { %1757 = shalt.err (!%p1754_p2)  }
  0xe1   : > { %s1758_s15 = scalar_lea.vmem %s2398_s19, 16  ;;  %p1763_p7 = scmp.lt.s32.totalorder %s2398_s19, %s2384_s20 }
  0xe2   : > { %p1759_p9 = scmp.ne.s32.totalorder %s2398_s19, %s1758_s15  ;;  %p1764_p13 = scmp.lt.s32.totalorder %s2412_s13, %s1758_s15 }
  0xe4   : > { %p1765_p0 = por %p1764_p13, %p1763_p7 }
  0xe6   : > { %p1766_p4 = pnand %p1765_p0, %p1759_p9 }
  0xe8   : > { %1769 = shalt.err (!%p1766_p4)  }
  0xe9   : > { %400 = dma.hbm_to_vmem [thread:$0]  %s387_s27, 16, %s2398_s19, [#allocation4 + $0x2] }
  0xea   : > { %s2068_s17 = smov [#allocation2 + $0x3]   ;;  %s418_s26 = sadd.s32 4, %s2381_s12 }
  0xeb   : > { %s414_s7 = sshll.u32 %s2068_s17, 4  ;;  %s1185_s1 = sshll.u32 %s2419_s11, 4  ;;  %s415_s7 = int_to_ptr.vmem [resolvable:$true] %s414_s7 }
  0xec   : > { %s404_s2 = scalar_lea.hbm %s2698_s24, %s1185_s1  ;;  %s419_s30 = sld [smem:[#allocation6 + %s418_s26]] }
  0xed   : > { %s1770_s22 = scalar_lea.hbm %s404_s2, 16  ;;  %p1773_p10 = scmp.lt.s32.totalorder %s404_s2, %s2698_s24 }
  0xee   : > { %p1771_p6 = scmp.ne.s32.totalorder %s404_s2, %s1770_s22  ;;  %p1774_p1 = scmp.lt.s32.totalorder %s2403_s23, %s1770_s22 }
  0xf0   : > { %p1775_p5 = por %p1774_p1, %p1773_p10 }
  0xf2   : > { %p1776_p3 = pnand %p1775_p5, %p1771_p6 }
  0xf4   : > { %1779 = shalt.err (!%p1776_p3)  }
  0xf5   : > { %s1780_s19 = scalar_lea.vmem %s415_s7, 16  ;;  %p1785_p11 = scmp.lt.s32.totalorder %s415_s7, %s2384_s20 }
  0xf6   : > { %p1781_p12 = scmp.ne.s32.totalorder %s415_s7, %s1780_s19  ;;  %p1786_p8 = scmp.lt.s32.totalorder %s2412_s13, %s1780_s19 }
  0xf8   : > { %p1787_p2 = por %p1786_p8, %p1785_p11 }
  0xfa   : > { %p1788_p9 = pnand %p1787_p2, %p1781_p12 }
  0xfc   : > { %1791 = shalt.err (!%p1788_p9)  }
  0xfd   : > { %417 = dma.hbm_to_vmem [thread:$0]  %s404_s2, 16, %s415_s7, [#allocation4 + $0x3] }
  0xfe   : > { %s435_s11 = sadd.s32 5, %s2381_s12  ;;  %s2069_s27 = smov [#allocation2 + $0x4]  }
  0xff   : > { %s431_s14 = sshll.u32 %s2069_s27, 4  ;;  %s436_s15 = sld [smem:[#allocation6 + %s435_s11]]  ;;  %s432_s14 = int_to_ptr.vmem [resolvable:$true] %s431_s14 }
 0x100   : > { %s2070_s17 = smov [#allocation2 + $0x5]   ;;  %s452_s1 = sadd.s32 6, %s2381_s12 }
 0x101   : > { %s448_s26 = sshll.u32 %s2070_s17, 4  ;;  %s1186_s18 = sshll.u32 %s419_s30, 4  ;;  %s2461_s26 = int_to_ptr.vmem [resolvable:$true] %s448_s26 }
 0x102   : > { %s421_s28 = scalar_lea.hbm %s2698_s24, %s1186_s18  ;;  %s2466_s5 = sld [smem:[#allocation6 + %s452_s1]] }
 0x103   : > { %s1792_s7 = scalar_lea.hbm %s421_s28, 16  ;;  %p1795_p13 = scmp.lt.s32.totalorder %s421_s28, %s2698_s24 }
 0x104   : > { %p1793_p7 = scmp.ne.s32.totalorder %s421_s28, %s1792_s7  ;;  %p1796_p0 = scmp.lt.s32.totalorder %s2403_s23, %s1792_s7 }
 0x106   : > { %p1797_p4 = por %p1796_p0, %p1795_p13 }
 0x108   : > { %p1798_p6 = pnand %p1797_p4, %p1793_p7 }
 0x10a   : > { %1801 = shalt.err (!%p1798_p6)  }
 0x10b   : > { %s1802_s11 = scalar_lea.vmem %s432_s14, 16  ;;  %p1807_p1 = scmp.lt.s32.totalorder %s432_s14, %s2384_s20 }
 0x10c   : > { %p1803_p10 = scmp.ne.s32.totalorder %s432_s14, %s1802_s11  ;;  %p1808_p5 = scmp.lt.s32.totalorder %s2412_s13, %s1802_s11 }
 0x10e   : > { %p1809_p3 = por %p1808_p5, %p1807_p1 }
 0x110   : > { %p1810_p12 = pnand %p1809_p3, %p1803_p10 }
 0x112   : > { %1813 = shalt.err (!%p1810_p12)  }
 0x113   : > { %434 = dma.hbm_to_vmem [thread:$0]  %s421_s28, 16, %s432_s14, [#allocation4 + $0x4] }
 0x114   : > { %s1187_s30 = sshll.u32 %s436_s15, 4  ;;  %s2071_s18 = smov [#allocation2 + $0x6]  }
 0x115   : > { %s438_s1 = scalar_lea.hbm %s2698_s24, %s1187_s30  ;;  %s465_s9 = sshll.u32 %s2071_s18, 4  ;;  %s466_s9 = int_to_ptr.vmem [resolvable:$true] %s465_s9 }
 0x116   : > { %s1814_s22 = scalar_lea.hbm %s438_s1, 16  ;;  %p1817_p8 = scmp.lt.s32.totalorder %s438_s1, %s2698_s24 }
 0x117   : > { %p1815_p11 = scmp.ne.s32.totalorder %s438_s1, %s1814_s22  ;;  %p1818_p2 = scmp.lt.s32.totalorder %s2403_s23, %s1814_s22 }
 0x119   : > { %p1819_p9 = por %p1818_p2, %p1817_p8 }
 0x11b   : > { %p1820_p7 = pnand %p1819_p9, %p1815_p11 }
 0x11d   : > { %1823 = shalt.err (!%p1820_p7)  }
 0x11e   : > { %s1824_s14 = scalar_lea.vmem %s2461_s26, 16  ;;  %p1829_p0 = scmp.lt.s32.totalorder %s2461_s26, %s2384_s20 }
 0x11f   : > { %p1825_p13 = scmp.ne.s32.totalorder %s2461_s26, %s1824_s14  ;;  %p1830_p4 = scmp.lt.s32.totalorder %s2412_s13, %s1824_s14 }
 0x121   : > { %p1831_p6 = por %p1830_p4, %p1829_p0 }
 0x123   : > { %p1832_p10 = pnand %p1831_p6, %p1825_p13 }
 0x125   : > { %1835 = shalt.err (!%p1832_p10)  }
 0x126   : > { %451 = dma.hbm_to_vmem [thread:$0]  %s438_s1, 16, %s2461_s26, [#allocation4 + $0x5] }
 0x127   : > { %s469_s15 = sadd.s32 7, %s2381_s12  ;;  %s1188_s28 = sshll.u32 %s2466_s5, 4 }
 0x128   : > { %s470_s19 = sld [smem:[#allocation6 + %s469_s15]]  ;;  %s455_s27 = scalar_lea.hbm %s2698_s24, %s1188_s28 }
 0x129   : > { %s1836_s17 = scalar_lea.hbm %s455_s27, 16  ;;  %p1839_p5 = scmp.lt.s32.totalorder %s455_s27, %s2698_s24 }
 0x12a   : > { %p1837_p1 = scmp.ne.s32.totalorder %s455_s27, %s1836_s17  ;;  %p1840_p3 = scmp.lt.s32.totalorder %s2403_s23, %s1836_s17 }
 0x12c   : > { %p1841_p12 = por %p1840_p3, %p1839_p5 }
 0x12e   : > { %p1842_p11 = pnand %p1841_p12, %p1837_p1 }
 0x130   : > { %1845 = shalt.err (!%p1842_p11)  }
 0x131   : > { %s1846_s7 = scalar_lea.vmem %s466_s9, 16  ;;  %p1851_p2 = scmp.lt.s32.totalorder %s466_s9, %s2384_s20 }
 0x132   : > { %p1847_p8 = scmp.ne.s32.totalorder %s466_s9, %s1846_s7  ;;  %p1852_p9 = scmp.lt.s32.totalorder %s2412_s13, %s1846_s7 }
 0x134   : > { %p1853_p7 = por %p1852_p9, %p1851_p2 }
 0x136   : > { %p1854_p13 = pnand %p1853_p7, %p1847_p8 }
 0x138   : > { %1857 = shalt.err (!%p1854_p13)  }
 0x139   : > { %468 = dma.hbm_to_vmem [thread:$0]  %s455_s27, 16, %s466_s9, [#allocation4 + $0x6] }
 0x13a   : > { %s2072_s12 = smov [#allocation2 + $0x7]   ;;  %s1189_s5 = sshll.u32 %s470_s19, 4 }
 0x13b   : > { %s482_s26 = sshll.u32 %s2072_s12, 4  ;;  %s472_s14 = scalar_lea.hbm %s2698_s24, %s1189_s5  ;;  %s483_s26 = int_to_ptr.vmem [resolvable:$true] %s482_s26 }
 0x13c   : > { %s1858_s15 = scalar_lea.hbm %s472_s14, 16  ;;  %p1861_p4 = scmp.lt.s32.totalorder %s472_s14, %s2698_s24 }
 0x13d   : > { %p1859_p0 = scmp.ne.s32.totalorder %s472_s14, %s1858_s15  ;;  %p1862_p6 = scmp.lt.s32.totalorder %s2403_s23, %s1858_s15 }
 0x13f   : > { %p1863_p10 = por %p1862_p6, %p1861_p4 }
 0x141   : > { %p1864_p1 = pnand %p1863_p10, %p1859_p0 }
 0x143   : > { %1867 = shalt.err (!%p1864_p1)  }
 0x144   : > { %s1868_s9 = scalar_lea.vmem %s483_s26, 16  ;;  %p1873_p3 = scmp.lt.s32.totalorder %s483_s26, %s2384_s20 }
 0x145   : > { %p1869_p5 = scmp.ne.s32.totalorder %s483_s26, %s1868_s9  ;;  %p1874_p12 = scmp.lt.s32.totalorder %s2412_s13, %s1868_s9 }
 0x147   : > { %p1875_p11 = por %p1874_p12, %p1873_p3 }
 0x149   : > { %p1876_p8 = pnand %p1875_p11, %p1869_p5 }
 0x14b   : > { %1879 = shalt.err (!%p1876_p8)  }
 0x14c   : > { %485 = dma.hbm_to_vmem [thread:$0]  %s472_s14, 16, %s483_s26, [#allocation4 + $0x7] }
 0x14d PF: > { %v1530_v1 = vld [vmem:[%s2359_s21 + $0x38] sm:$0xff]   ;;  %v2073_v2 = vmov 0.0   ;;  %v1531_v3 = vld [vmem:[%s2359_s21 + $0x30] sm:$0xff]   ;;  %vm2074_vm0 = vmmov 0   ;;  %v1532_v4 = vld [vmem:[%s2359_s21 + $0x28] sm:$0xff]   ;;  %s2699_s20 = scalar_lea.vmem [#allocation7], %s2350_s25 }
 0x14e   : > { %1272 = vmatprep.subr.bf16.mxu0 %v2073_v2  ;;  %1288 = vmatprep.mubr.msk.bf16.mxu0 %vm2074_vm0, %v2073_v2  ;;  %v1533_v5 = vld [vmem:[%s2359_s21 + $0x20] sm:$0xff]   ;;  %v1534_v6 = vld [vmem:[%s2359_s21 + $0x18] sm:$0xff]   ;;  %v1535_v7 = vld [vmem:[%s2359_s21 + $0x10] sm:$0xff]   ;;  %s2700_s23 = sld [smem:[#allocation52_spill]] }
 0x14f   : > { %1273 = vmatpush3.bf16.msra.mxu0 %v1530_v1  ;;  %v1536_v8 = vld [vmem:[%s2359_s21 + $0x8] sm:$0xff]   ;;  %v1537_v9 = vld [vmem:[%s2359_s21] sm:$0xff]   ;;  %v487_v10 = vld [vmem:[%s2699_s20] sm:$0xf] }
 0x150   : > { %1274 = vmatprep.subr.bf16.mxu0 %v2073_v2  ;;  %v486_v11 = vld [vmem:[#allocation3] sm:$0xff] }
 0x153   : > { %1275 = vmatpush3.bf16.msra.mxu0 %v1531_v3 }
 0x154   : > { %1276 = vmatprep.subr.bf16.mxu0 %v2073_v2  ;;  %p1198_p2 = scmp.ne.s32.totalorder %s2700_s23, 1 }
 0x157   : > { %1277 = vmatpush3.bf16.msra.mxu0 %v1532_v4 }
 0x158   : > { %1278 = vmatprep.subr.bf16.mxu0 %v2073_v2 }
 0x15b   : > { %1279 = vmatpush3.bf16.msra.mxu0 %v1533_v5 }
 0x15c   : > { %1280 = vmatprep.subr.bf16.mxu0 %v2073_v2 }
 0x15f   : > { %1281 = vmatpush3.bf16.msra.mxu0 %v1534_v6 }
 0x160   : > { %1282 = vmatprep.subr.bf16.mxu0 %v2073_v2 }
 0x163   : > { %1283 = vmatpush3.bf16.msra.mxu0 %v1535_v7 }
 0x164   : > { %1284 = vmatprep.subr.bf16.mxu0 %v2073_v2 }
 0x167   : > { %1285 = vmatpush3.bf16.msra.mxu0 %v1536_v8 }
 0x168   : > { %1286 = vmatprep.subr.bf16.mxu0 %v2073_v2 }
 0x16b   : > { %1287 = vmatpush3.bf16.msra.mxu0 %v1537_v9 }
 0x16e   : > { %1289 = vmatmul.mubr.bf16.vlgmr.msra.gmra.mxu0 %v487_v10 }
 0x22e   : > { %v586_v12 = vpop.f32.mrf.mxu0 }
 0x22f   : > { %v592_v13 = vadd.f32 %v586_v12, %v486_v11 }
 0x230   : > { %v1290_v14 = vpop.f32.mrf.mxu0  ;;  %597 = sbr.rel (%p1198_p2) target bundleno = 1044 (0x414), region = 100 }
 0x231   : > { %593 = vst [vmem:[#allocation3] sm:$0xff] %v592_v13 }
 0x232   : > { %v589_v15 = vpop.f32.mrf.mxu0 }
 0x234   : > { %v1291_v16 = vpop.f32.mrf.mxu0 }
 0x235   : > { %1980 = dma.done.wait [#allocation4], 16 }
 0x236   : > { %1981 = vsyncadd [#allocation4], 4294967280 }
 0x237   : > { %1982 = dma.done.wait [#allocation4 + $0x1], 16 }
 0x238   : > { %1983 = vsyncadd [#allocation4 + $0x1], 4294967280 }
 0x239   : > { %1984 = dma.done.wait [#allocation4 + $0x2], 16 }
 0x23a   : > { %1985 = vsyncadd [#allocation4 + $0x2], 4294967280 }
 0x23b   : > { %1986 = dma.done.wait [#allocation4 + $0x3], 16 }
 0x23c   : > { %1987 = vsyncadd [#allocation4 + $0x3], 4294967280 }
 0x23d   : > { %1988 = dma.done.wait [#allocation4 + $0x4], 16 }
 0x23e   : > { %1989 = vsyncadd [#allocation4 + $0x4], 4294967280 }
 0x23f   : > { %1990 = dma.done.wait [#allocation4 + $0x5], 16 }
 0x240   : > { %1991 = vsyncadd [#allocation4 + $0x5], 4294967280 }
 0x241   : > { %1992 = dma.done.wait [#allocation4 + $0x6], 16 }
 0x242   : > { %1993 = vsyncadd [#allocation4 + $0x6], 4294967280 }
 0x243   : > { %1994 = dma.done.wait [#allocation4 + $0x7], 16 }
 0x244   : > { %1995 = vsyncadd [#allocation4 + $0x7], 4294967280  ;;  %v2075_v17 = vmov 0.0   ;;  %vm2076_vm1 = vmmov 0   ;;  %v1538_v18 = vld [vmem:[#allocation13 + $0x38] sm:$0xff]   ;;  %v1540_v20 = vld [vmem:[#allocation13 + $0x30] sm:$0xff]  }
 0x245   : > { %1292 = vmatprep.subr.bf16.mxu0 %v2075_v17  ;;  %1312 = vmatprep.subr.bf16.mxu1 %v2075_v17  ;;  %v1539_v19 = vld [vmem:[#allocation12 + $0x38] sm:$0xff]   ;;  %v1541_v21 = vld [vmem:[#allocation12 + $0x30] sm:$0xff]   ;;  %v1542_v22 = vld [vmem:[#allocation13 + $0x28] sm:$0xff]   ;;  %s2701_s25 = scalar_lea.vmem [#allocation16], %s2376_s3 }
 0x246   : > { %1308 = vmatprep.mubr.msk.bf16.mxu0 %vm2076_vm1, %v2075_v17  ;;  %1328 = vmatprep.mubr.msk.bf16.mxu1 %vm2076_vm1, %v2075_v17  ;;  %v1543_v23 = vld [vmem:[#allocation12 + $0x28] sm:$0xff]   ;;  %v1544_v24 = vld [vmem:[#allocation13 + $0x20] sm:$0xff]   ;;  %v1546_v26 = vld [vmem:[#allocation13 + $0x18] sm:$0xff]  }
 0x247   : > { %1293 = vmatpush3.bf16.xpose.msra.mxu0 %v1538_v18  ;;  %1313 = vmatpush3.bf16.xpose.msra.mxu1 %v1539_v19  ;;  %v1545_v25 = vld [vmem:[#allocation12 + $0x20] sm:$0xff]   ;;  %v1547_v27 = vld [vmem:[#allocation12 + $0x18] sm:$0xff]   ;;  %v1548_v28 = vld [vmem:[#allocation13 + $0x10] sm:$0xff]  }
 0x248   : > { %1294 = vmatprep.subr.bf16.mxu0 %v2075_v17  ;;  %1314 = vmatprep.subr.bf16.mxu1 %v2075_v17  ;;  %v1549_v29 = vld [vmem:[#allocation12 + $0x10] sm:$0xff]   ;;  %v1550_v30 = vld [vmem:[#allocation13 + $0x8] sm:$0xff]   ;;  %v1552_v32 = vld [vmem:[#allocation13] sm:$0xff]  }
 0x249   : > { %v1551_v31 = vld [vmem:[#allocation12 + $0x8] sm:$0xff]   ;;  %v1553_v33 = vld [vmem:[#allocation12] sm:$0xff]   ;;  %v624_v34 = vld [vmem:[#allocation3] sm:$0xff] }
 0x24a   : > { %v622_v35 = vld [vmem:[#allocation2] sm:$0xff]  ;;  %v625_v36 = vpack.c.bf16 %v624_v34, %v624_v34  ;;  %v1554_v38 = vld [vmem:[#allocation15 + $0x38] sm:$0xff]   ;;  %v1555_v39 = vld [vmem:[#allocation15 + $0x30] sm:$0xff]  }
 0x24b   : > { %v623_v37 = vpack.c.bf16 %v622_v35, %v622_v35  ;;  %v1556_v40 = vld [vmem:[#allocation15 + $0x28] sm:$0xff]   ;;  %v1557_v41 = vld [vmem:[#allocation15 + $0x20] sm:$0xff]   ;;  %v1558_v42 = vld [vmem:[#allocation15 + $0x18] sm:$0xff]  }
 0x24c   : > { %v1559_v43 = vld [vmem:[#allocation15 + $0x10] sm:$0xff]   ;;  %v1560_v44 = vld [vmem:[#allocation15 + $0x8] sm:$0xff]   ;;  %v1561_v45 = vld [vmem:[#allocation15] sm:$0xff]  }
 0x24f   : > { %1295 = vmatpush3.bf16.xpose.msra.mxu0 %v1540_v20  ;;  %1315 = vmatpush3.bf16.xpose.msra.mxu1 %v1541_v21 }
 0x250   : > { %1296 = vmatprep.subr.bf16.mxu0 %v2075_v17  ;;  %1316 = vmatprep.subr.bf16.mxu1 %v2075_v17 }
 0x257   : > { %1297 = vmatpush3.bf16.xpose.msra.mxu0 %v1542_v22  ;;  %1317 = vmatpush3.bf16.xpose.msra.mxu1 %v1543_v23 }
 0x258   : > { %1298 = vmatprep.subr.bf16.mxu0 %v2075_v17  ;;  %1318 = vmatprep.subr.bf16.mxu1 %v2075_v17 }
 0x25f   : > { %1299 = vmatpush3.bf16.xpose.msra.mxu0 %v1544_v24  ;;  %1319 = vmatpush3.bf16.xpose.msra.mxu1 %v1545_v25 }
 0x260   : > { %1300 = vmatprep.subr.bf16.mxu0 %v2075_v17  ;;  %1320 = vmatprep.subr.bf16.mxu1 %v2075_v17 }
 0x267   : > { %1301 = vmatpush3.bf16.xpose.msra.mxu0 %v1546_v26  ;;  %1321 = vmatpush3.bf16.xpose.msra.mxu1 %v1547_v27 }
 0x268   : > { %1302 = vmatprep.subr.bf16.mxu0 %v2075_v17  ;;  %1322 = vmatprep.subr.bf16.mxu1 %v2075_v17 }
 0x26f   : > { %1303 = vmatpush3.bf16.xpose.msra.mxu0 %v1548_v28  ;;  %1323 = vmatpush3.bf16.xpose.msra.mxu1 %v1549_v29 }
 0x270   : > { %1304 = vmatprep.subr.bf16.mxu0 %v2075_v17  ;;  %1324 = vmatprep.subr.bf16.mxu1 %v2075_v17 }
 0x277   : > { %1305 = vmatpush3.bf16.xpose.msra.mxu0 %v1550_v30  ;;  %1325 = vmatpush3.bf16.xpose.msra.mxu1 %v1551_v31 }
 0x278   : > { %1306 = vmatprep.subr.bf16.mxu0 %v2075_v17  ;;  %1326 = vmatprep.subr.bf16.mxu1 %v2075_v17 }
 0x27f   : > { %1307 = vmatpush3.bf16.xpose.msra.mxu0 %v1552_v32  ;;  %1327 = vmatpush3.bf16.xpose.msra.mxu1 %v1553_v33 }
 0x280   : > { %1332 = vmatprep.subr.bf16.mxu0 %v2075_v17 }
 0x286   : > { %1309 = vmatmul.mubr.bf16.vlgmr.msra.gmra.mxu0 %v625_v36  ;;  %1329 = vmatmul.mubr.bf16.vlgmr.msra.gmra.mxu1 %v623_v37 }
 0x287   : > { %1333 = vmatpush3.bf16.xpose.msra.mxu0 %v1554_v38  ;;  %1348 = vmatprep.mubr.msk.bf16.mxu0 %vm2076_vm1, %v2075_v17 }
 0x288   : > { %1334 = vmatprep.subr.bf16.mxu0 %v2075_v17 }
 0x28f   : > { %1335 = vmatpush3.bf16.xpose.msra.mxu0 %v1555_v39 }
 0x290   : > { %1336 = vmatprep.subr.bf16.mxu0 %v2075_v17 }
 0x297   : > { %1337 = vmatpush3.bf16.xpose.msra.mxu0 %v1556_v40 }
 0x298   : > { %1338 = vmatprep.subr.bf16.mxu0 %v2075_v17 }
 0x29f   : > { %1339 = vmatpush3.bf16.xpose.msra.mxu0 %v1557_v41 }
 0x2a0   : > { %1340 = vmatprep.subr.bf16.mxu0 %v2075_v17 }
 0x2a7   : > { %1341 = vmatpush3.bf16.xpose.msra.mxu0 %v1558_v42 }
 0x2a8   : > { %1342 = vmatprep.subr.bf16.mxu0 %v2075_v17 }
 0x2af   : > { %1343 = vmatpush3.bf16.xpose.msra.mxu0 %v1559_v43 }
 0x2b0   : > { %1344 = vmatprep.subr.bf16.mxu0 %v2075_v17 }
 0x2b7   : > { %1345 = vmatpush3.bf16.xpose.msra.mxu0 %v1560_v44 }
 0x2b8   : > { %1346 = vmatprep.subr.bf16.mxu0 %v2075_v17 }
 0x2bf   : > { %1347 = vmatpush3.bf16.xpose.msra.mxu0 %v1561_v45 }
 0x346   : > { %v740_v46 = vpop.f32.mrf.mxu0  ;;  %v828_v47 = vpop.f32.mrf.mxu1 }
 0x347   : > { %v829_v48 = vadd.f32 %v828_v47, %v740_v46 }
 0x348   : > { %v1310_v49 = vpop.f32.mrf.mxu0  ;;  %v1330_v50 = vpop.f32.mrf.mxu1 }
 0x349   : > { %v834_v51 = vmax.f32 %v829_v48, 0.0 }
 0x34a   : > { %v743_v52 = vpop.f32.mrf.mxu0  ;;  %v831_v53 = vpop.f32.mrf.mxu1 }
 0x34b   : > { %v835_v54 = vpack.c.bf16 %v834_v51, %v834_v51 }
 0x34c   : > { %v1311_v55 = vpop.f32.mrf.mxu0  ;;  %v1331_v56 = vpop.f32.mrf.mxu1 }
 0x34d   : > { %1349 = vmatmul.mubr.bf16.vlgmr.msra.gmra.mxu0 %v835_v54 }
 0x40d   : > { %v934_v57 = vpop.f32.mrf.mxu0 }
 0x40e   : > { %940 = vst [vmem:[%s2701_s25] sm:$0xff] %v934_v57 }
 0x40f   : > { %v1350_v58 = vpop.f32.mrf.mxu0 }
 0x411   : > { %v937_v59 = vpop.f32.mrf.mxu0 }
 0x413   : > { %v1351_v60 = vpop.f32.mrf.mxu0 }
 0x414 PF: > { %s2702_s21 = sld [smem:[#allocation53_spill]]  ;;  %s2706_s7 = scalar_lea.vmem [#allocation16], %s2376_s3 }
 0x415   : > { %s2703_s13 = sld [smem:[#allocation50_spill]]  ;;  %s955_s12 = sshll.u32 %s2706_s7, 4  ;;  %s956_s12 = int_to_ptr.vmem [resolvable:$true] %s955_s12 }
 0x416   : > { %s2704_s19 = sld [smem:[#allocation57_spill]]  ;;  %s1880_s1 = scalar_lea.vmem %s956_s12, 128 }
 0x417   : > { %s2705_s18 = sld [smem:[#allocation68_spill]]  ;;  %p1881_p9 = scmp.ne.s32.totalorder %s956_s12, %s1880_s1 }
 0x418   : > { %s2077_s2 = smov [#allocation16]  }
 0x419   : > { %s1884_s14 = sshll.u32 %s2077_s2, 4  ;;  %s1885_s14 = int_to_ptr.vmem [resolvable:$false] %s1884_s14 }
 0x41a   : > { %s1224_s30 = sshll.u32 %s2702_s21, 7  ;;  %s1886_s15 = scalar_lea.vmem %s1885_s14, 256 }
 0x41b   : > { %s2707_s26 = sand.u32 1, %s2703_s13   ;;  %p1887_p4 = scmp.lt.s32.totalorder %s956_s12, %s1885_s14 }
 0x41c   : > { %s942_s5 = scalar_lea.sflag [#allocation9], %s2707_s26  ;;  %p2708_p7 = scmp.ne.s32.totalorder %s2704_s19, 0 }
 0x41d   : > { %s953_s22 = scalar_lea.hbm %s2705_s18, %s1224_s30  ;;  %p1888_p6 = scmp.lt.s32.totalorder %s1886_s15, %s1880_s1 }
 0x41e   : > { %p1882_p13 = pnand %p1881_p9, %p2708_p7 }
 0x41f   : > { %p1889_p10 = por %p1888_p6, %p1887_p4 }
 0x420   : > { %p1883_p0 = pneg %p1882_p13 }
 0x422   : > { %p1890_p1 = pnand %p1889_p10, %p1883_p0 }
 0x424   : > { %1893 = shalt.err (!%p1890_p1)
}
 0x425   : > { %s1894_s28 = scalar_lea.hbm %s953_s22, 128  ;;  %s1898_s9 = scalar_lea.hbm %s2705_s18, 256 }
 0x426   : > { %p1895_p5 = scmp.ne.s32.totalorder %s953_s22, %s1894_s28  ;;  %p1899_p11 = scmp.lt.s32.totalorder %s953_s22, %s2705_s18 }
 0x427   : > { %p1900_p8 = scmp.lt.s32.totalorder %s1898_s9, %s1894_s28 }
 0x428   : > { %p1896_p3 = pnand %p1895_p5, %p2708_p7 }
 0x429   : > { %p1901_p2 = por %p1900_p8, %p1899_p11 }
 0x42a   : > { %p1897_p12 = pneg %p1896_p3 }
 0x42c   : > { %p1902_p9 = pnand %p1901_p2, %p1897_p12 }
 0x42e   : > { %1905 = shalt.err (!%p1902_p9)
}
 0x42f   : > { %1368 = dma.vmem_to_hbm [thread:$0]  (%p2708_p7), %s956_s12, 128, %s953_s22, %s942_s5  }
 0x430 PF: > { %s2709_s25 = sld [smem:[#allocation49_spill]]  ;;  %p1398_p13 = scmp.ge.s32.totalorder %s2054_s16, 2 }
 0x431   : > { %s2710_s21 = sld [smem:[#allocation58_spill]] }
 0x436   : > { %s967_s13 = sand.u32 1, %s2709_s25  }
 0x437   : > { %p2711_p0 = scmp.ne.s32.totalorder %s2710_s21, 0  ;;  %s968_s30 = scalar_lea.sflag [#allocation9], %s967_s13 }
 0x439   : > { %p1388_p4 = pnand %p1398_p13, %p2711_p0 }
 0x43b   : > { %p1389_p6 = pneg %p1388_p4 }
 0x43d   : > { %1997 = dma.done.wait (%p1389_p6), %s968_s30, 128  }
 0x43e   : > { %1999 = vsyncadd (%p1389_p6), %s968_s30, 4294967168  ;;  %s31_s16 = sadd.s32 1, %s2054_s16   ;;  %s2713_s19 = sld [smem:[#allocation50_spill]] }
 0x43f   : > { %p2575_p10 = scmp.ge.s32.totalorder %s31_s16, 6   ;;  %s2714_s17 = sld [smem:[#allocation51_spill]] }
 0x440   : > { %s2715_s11 = sld [smem:[#allocation61_spill]]  ;;  %s2722_s28 = smov %s2010_s29 }
 0x441   : > { %s2716_s12 = sld [smem:[#allocation54_spill]]  ;;  %s2723_s29 = smov %s2309_s6 }
 0x442   : > { %s2717_s13 = sld [smem:[#allocation55_spill]]  ;;  %s2724_s30 = smov %s2018_s8 }
 0x443   : > { %s2718_s14 = sld [smem:[#allocation59_spill]]  ;;  %s2725_s8 = smov %s2022_s0 }
 0x444   : > { %s2719_s15 = sld [smem:[#allocation60_spill]]  ;;  %s2721_s27 = smov %s2713_s19 }
 0x445   : > { %s2726_s0 = smov %s2303_s4  ;;  %s2727_s9 = smov %s2030_s10 }
 0x446   : > { %s2728_s10 = smov %s2714_s17  ;;  %30 = sbr.rel (!%p2575_p10) target bundleno = 25 (0x19), region = 186 }
 0x44b   :  { %973 = vsyncpa [#allocation8], 1 }
 0x44c   :  { %975 = vsyncpa [#allocation8 + $0x1], 1 }
 0x44d   :  { %976 = vsyncpa [#allocation11], 1 }
 0x44e   :  { %978 = vsyncpa [#allocation11 + $0x1], 1 }
 0x44f   :  { %979 = vsyncpa [#allocation14], 1 }
 0x450   :  { %980 = vsyncpa [#allocation9], 1 }
 0x451   :  { %982 = vsyncpa [#allocation9 + $0x1], 1 }
 0x452   :  { %983 = vsyncmov [#allocation4] }
 0x455   :  { %s984_s4 = vpop.sfrf %983 }
 0x456   :  { %p1227_p7 = scmp.ne.s32.totalorder %s984_s4, 0 }
 0x458   :  { %988 = shalt.err (%p1227_p7)  }
 0x459   :  { %990 = vsyncmov [#allocation4 + $0x1] }
 0x45c   :  { %s991_s6 = vpop.sfrf %990 }
 0x45d   :  { %p1228_p1 = scmp.ne.s32.totalorder %s991_s6, 0 }
 0x45f   :  { %995 = shalt.err (%p1228_p1)  }
 0x460   :  { %997 = vsyncmov [#allocation4 + $0x2] }
 0x463   :  { %s998_s7 = vpop.sfrf %997 }
 0x464   :  { %p1229_p5 = scmp.ne.s32.totalorder %s998_s7, 0 }
 0x466   :  { %1002 = shalt.err (%p1229_p5)  }
 0x467   :  { %1004 = vsyncmov [#allocation4 + $0x3] }
 0x46a   :  { %s1005_s29 = vpop.sfrf %1004 }
 0x46b   :  { %p1230_p3 = scmp.ne.s32.totalorder %s1005_s29, 0 }
 0x46d   :  { %1009 = shalt.err (%p1230_p3)  }
 0x46e   :  { %1011 = vsyncmov [#allocation4 + $0x4] }
 0x471   :  { %s1012_s8 = vpop.sfrf %1011 }
 0x472   :  { %p1231_p12 = scmp.ne.s32.totalorder %s1012_s8, 0 }
 0x474   :  { %1016 = shalt.err (%p1231_p12)  }
 0x475   :  { %1018 = vsyncmov [#allocation4 + $0x5] }
 0x478   :  { %s1019_s0 = vpop.sfrf %1018 }
 0x479   :  { %p1232_p11 = scmp.ne.s32.totalorder %s1019_s0, 0 }
 0x47b   :  { %1023 = shalt.err (%p1232_p11)  }
 0x47c   :  { %1025 = vsyncmov [#allocation4 + $0x6] }
 0x47f   :  { %s1026_s10 = vpop.sfrf %1025 }
 0x480   :  { %p1233_p8 = scmp.ne.s32.totalorder %s1026_s10, 0 }
 0x482   :  { %1030 = shalt.err (%p1233_p8)  }
 0x483   :  { %1032 = vsyncmov [#allocation4 + $0x7] }
 0x486   :  { %s1033_s16 = vpop.sfrf %1032 }
 0x487   :  { %p1234_p2 = scmp.ne.s32.totalorder %s1033_s16, 0 }
 0x489   :  { %1037 = shalt.err (%p1234_p2)  }

</bundles_post_ra>
